<compile_context>
chip_gen: v6e
topology: v6e:2x2x1
jax: 0.10.0
libtpu: 0.0.40
codegen_flags: <defaults>
</compile_context>

<pallas_src>
import math
import functools

import jax
import jax.numpy as jnp
from jax import lax
from jax.experimental import pallas as pl
from jax.experimental.pallas import tpu as pltpu


def _cdc_kernel(xp_ref, w_ref, o_ref, *, H, W, K):
    # xp_ref : (Nb, C_in, H+2p, W+2p)   padded inputs for this batch chunk
    # w_ref  : (C_out, K*K*C_in)        folded + flattened conv weight
    # o_ref  : (Nb, C_out, H*W)         lane-dense output
    Nb, C_in = xp_ref.shape[0], xp_ref.shape[1]
    HW = H * W

    w_mat = w_ref[...]  # (C_out, K*K*C_in)

    for n in range(Nb):                 # static, unrolled over the chunk
        x_img = xp_ref[n]               # (C_in, Hp, Wp)
        # Build the tap-stacked RHS once per image: rows ordered (kh, kw, c)
        # to match the wrapper's weight flattening.
        taps = []
        for kh in range(K):
            for kw in range(K):
                taps.append(
                    x_img[:, kh:kh + H, kw:kw + W].reshape(C_in, HW))
        rhs = jnp.concatenate(taps, axis=0)          # (K*K*C_in, HW)
        # Single MXU matmul per image; contraction depth K*K*C_in.
        out = jnp.dot(w_mat, rhs, preferred_element_type=jnp.float32)
        o_ref[n] = out.astype(o_ref.dtype)           # (C_out, HW), lane-dense


def conv2d_cd(x, weight, theta=0.7, block_n=None):
    """x: (N, C_in, H, W); weight: (C_out, C_in, K, K). stride=1, padding=K//2."""
    N, C_in, H, W = x.shape
    C_out, C_in_w, K, K2 = weight.shape
    assert C_in == C_in_w and K == K2 and K % 2 == 1
    pad = (K - 1) // 2
    Hp, Wp = H + 2 * pad, W + 2 * pad
    HW = H * W
    KKC = K * K * C_in

    # --- parameter setup (plain JAX glue) -----------------------------------
    # Fold the central-difference term into the center tap (trace-time branch,
    # exactly matching the PyTorch theta==0 early-return).
    if math.fabs(theta - 0.0) < 1e-8:
        w_eff = weight
    else:
        w_eff = weight.at[:, :, pad, pad].add(
            -float(theta) * weight.sum(axis=(2, 3)))
    # Flatten to (C_out, K*K*C_in) with contraction ordered (kh, kw, c).
    w_mat = w_eff.transpose(0, 2, 3, 1).reshape(C_out, KKC)

    # Zero-pad the activation (halo for the 3x3 taps).
    xp = jnp.pad(x, ((0, 0), (0, 0), (pad, pad), (pad, pad)))

    # --- batch-chunk selection ----------------------------------------------
    # Largest chunk <= 8 that still leaves >= 2 grid steps (pipelining /
    # megacore); fall back to the whole batch for N == 1.
    if block_n is None:
        block_n = N
        for nb in (8, 4, 2, 1):
            if N % nb == 0 and (N // nb) >= 2:
                block_n = nb
                break
    Nb = block_n
    assert N % Nb == 0

    kernel = functools.partial(_cdc_kernel, H=H, W=W, K=K)

    out_flat = pl.pallas_call(
        kernel,
        out_shape=jax.ShapeDtypeStruct((N, C_out, HW), x.dtype),
        grid_spec=pltpu.PrefetchScalarGridSpec(
            num_scalar_prefetch=0,
            grid=(N // Nb,),
            in_specs=[
                pl.BlockSpec((Nb, C_in, Hp, Wp), lambda n: (n, 0, 0, 0)),
                pl.BlockSpec((C_out, KKC), lambda n: (0, 0)),
            ],
            out_specs=pl.BlockSpec((Nb, C_out, HW), lambda n: (n, 0, 0)),
        ),
        compiler_params=pltpu.CompilerParams(
            dimension_semantics=("parallel",)),
    )(xp, w_mat)

    # Free (metadata-only) reshape back to NCHW.
    return out_flat.reshape(N, C_out, H, W)


def _reference_conv2d_cd(x, weight, theta):
    """Pure-JAX reference matching the PyTorch module."""
    pad = (weight.shape[2] - 1) // 2
    dn = lax.conv_dimension_numbers(x.shape, weight.shape,
                                    ("NCHW", "OIHW", "NCHW"))
    out_normal = lax.conv_general_dilated(
        x, weight, window_strides=(1, 1),
        padding=[(pad, pad), (pad, pad)], dimension_numbers=dn)
    if math.fabs(theta - 0.0) < 1e-8:
        return out_normal
    kdiff = weight.sum(axis=(2, 3))[:, :, None, None]
    out_diff = lax.conv_general_dilated(
        x, kdiff, window_strides=(1, 1),
        padding=[(0, 0), (0, 0)], dimension_numbers=dn)
    return out_normal - theta * out_diff


if __name__ == "__main__":
    # Small deterministic example consistent with the module:
    # in_channels=4, out_channels=8, kernel_size=3, stride=1, padding=1,
    # bias=False, theta=0.7; input NCHW = (2, 4, 16, 16).
    key = jax.random.PRNGKey(0)
    kx, kw = jax.random.split(key)

    N, C_in, C_out, H, W, K = 2, 4, 8, 16, 16, 3
    x = jax.random.normal(kx, (N, C_in, H, W), dtype=jnp.float32)
    # Deterministic Kaiming-uniform-like init (same bound as nn.Conv2d default).
    fan_in = C_in * K * K
    bound = 1.0 / math.sqrt(fan_in)
    weight = jax.random.uniform(kw, (C_out, C_in, K, K),
                                minval=-bound, maxval=bound,
                                dtype=jnp.float32)

    theta = 0.7
    out = conv2d_cd(x, weight, theta=theta)
    jax.block_until_ready(out)
    assert out.shape == (N, C_out, H, W), out.shape

    # Loose sanity check vs. the pure-JAX reference (tolerates MXU/XLA
    # reduced-precision matmul passes and FP reassociation).
    ref = _reference_conv2d_cd(x, weight, theta)
    err = float(jnp.max(jnp.abs(out - ref)))
    assert err < 5e-2, f"max abs error vs reference: {err}"

    print("KERNEL_OK")
</pallas_src>

<mosaic_0001>
module attributes {stable_mosaic.version = 11 : i64} {
  func.func @_cdc_kernel(%arg0: i32, %arg1: memref<1x4x18x18xf32, #tpu.memory_space<vmem>>, %arg2: memref<8x36xf32, #tpu.memory_space<vmem>>, %arg3: memref<1x8x256xf32, #tpu.memory_space<vmem>>) attributes {dimension_semantics = [#tpu.dimension_semantics<parallel>], iteration_bounds = array<i64: 2>, scalar_prefetch = 0 : i64, scratch_operands = 0 : i64, tpu.core_type = #tpu.core_type<tc>, window_params = [{transform_indices = @transform_0, window_bounds = array<i64: 1, 4, 18, 18>}, {pipeline_mode = #tpu.pipeline_mode<synchronous>, transform_indices = @transform_1, window_bounds = array<i64: 8, 36>}, {transform_indices = @transform_2, window_bounds = array<i64: 1, 8, 256>}]} {
    %c0 = arith.constant 0 : index
    %c0_0 = arith.constant 0 : index
    %0 = vector.load %arg2[%c0, %c0_0] : memref<8x36xf32, #tpu.memory_space<vmem>>, vector<8x36xf32>
    %c0_1 = arith.constant 0 : index
    %c0_2 = arith.constant 0 : index
    %c0_3 = arith.constant 0 : index
    %c0_4 = arith.constant 0 : index
    %1 = vector.load %arg1[%c0_1, %c0_2, %c0_3, %c0_4] : memref<1x4x18x18xf32, #tpu.memory_space<vmem>>, vector<1x4x18x18xf32>
    %2 = vector.shape_cast %1 : vector<1x4x18x18xf32> to vector<4x18x18xf32>
    %3 = vector.extract_strided_slice %2 {offsets = [0, 0, 0], sizes = [4, 16, 16], strides = [1, 1, 1]} : vector<4x18x18xf32> to vector<4x16x16xf32>
    %4 = vector.shape_cast %3 : vector<4x16x16xf32> to vector<4x256xf32>
    %5 = vector.extract_strided_slice %2 {offsets = [0, 0, 1], sizes = [4, 16, 16], strides = [1, 1, 1]} : vector<4x18x18xf32> to vector<4x16x16xf32>
    %6 = vector.shape_cast %5 : vector<4x16x16xf32> to vector<4x256xf32>
    %7 = vector.extract_strided_slice %2 {offsets = [0, 0, 2], sizes = [4, 16, 16], strides = [1, 1, 1]} : vector<4x18x18xf32> to vector<4x16x16xf32>
    %8 = vector.shape_cast %7 : vector<4x16x16xf32> to vector<4x256xf32>
    %9 = vector.extract_strided_slice %2 {offsets = [0, 1, 0], sizes = [4, 16, 16], strides = [1, 1, 1]} : vector<4x18x18xf32> to vector<4x16x16xf32>
    %10 = vector.shape_cast %9 : vector<4x16x16xf32> to vector<4x256xf32>
    %11 = vector.extract_strided_slice %2 {offsets = [0, 1, 1], sizes = [4, 16, 16], strides = [1, 1, 1]} : vector<4x18x18xf32> to vector<4x16x16xf32>
    %12 = vector.shape_cast %11 : vector<4x16x16xf32> to vector<4x256xf32>
    %13 = vector.extract_strided_slice %2 {offsets = [0, 1, 2], sizes = [4, 16, 16], strides = [1, 1, 1]} : vector<4x18x18xf32> to vector<4x16x16xf32>
    %14 = vector.shape_cast %13 : vector<4x16x16xf32> to vector<4x256xf32>
    %15 = vector.extract_strided_slice %2 {offsets = [0, 2, 0], sizes = [4, 16, 16], strides = [1, 1, 1]} : vector<4x18x18xf32> to vector<4x16x16xf32>
    %16 = vector.shape_cast %15 : vector<4x16x16xf32> to vector<4x256xf32>
    %17 = vector.extract_strided_slice %2 {offsets = [0, 2, 1], sizes = [4, 16, 16], strides = [1, 1, 1]} : vector<4x18x18xf32> to vector<4x16x16xf32>
    %18 = vector.shape_cast %17 : vector<4x16x16xf32> to vector<4x256xf32>
    %19 = vector.extract_strided_slice %2 {offsets = [0, 2, 2], sizes = [4, 16, 16], strides = [1, 1, 1]} : vector<4x18x18xf32> to vector<4x16x16xf32>
    %20 = vector.shape_cast %19 : vector<4x16x16xf32> to vector<4x256xf32>
    %21 = tpu.concatenate %4, %6, %8, %10, %12, %14, %16, %18, %20 in 0 : vector<4x256xf32>, vector<4x256xf32>, vector<4x256xf32>, vector<4x256xf32>, vector<4x256xf32>, vector<4x256xf32>, vector<4x256xf32>, vector<4x256xf32>, vector<4x256xf32> -> vector<36x256xf32>
    %cst = arith.constant dense<0.000000e+00> : vector<8x256xf32>
    %22 = tpu.matmul %0, %21, %cst {dimension_numbers = #tpu.dot_dimension_numbers<[1], [0], [0], [1], [0, 0, 1, 1], [], []>} : vector<8x36xf32>, vector<36x256xf32>, vector<8x256xf32> -> vector<8x256xf32>
    %c0_5 = arith.constant 0 : index
    %c0_6 = arith.constant 0 : index
    %c0_7 = arith.constant 0 : index
    %23 = vector.load %arg3[%c0_5, %c0_6, %c0_7] : memref<1x8x256xf32, #tpu.memory_space<vmem>>, vector<1x8x256xf32>
    %24 = vector.shape_cast %23 : vector<1x8x256xf32> to vector<8x256xf32>
    %25 = vector.shape_cast %22 : vector<8x256xf32> to vector<1x8x256xf32>
    tpu.vector_store %arg3[%c0_5, %c0_6, %c0_7], %25 {strides = array<i32>} : memref<1x8x256xf32, #tpu.memory_space<vmem>>, vector<1x8x256xf32>,
    return
  }
  func.func @transform_0(%arg0: i32) -> (i32, i32, i32, i32) {
    %c0_i32 = arith.constant 0 : i32
    %c0_i32_0 = arith.constant 0 : i32
    %c0_i32_1 = arith.constant 0 : i32
    %c0_i32_2 = arith.constant 0 : i32
    return %arg0, %c0_i32, %c0_i32_0, %c0_i32_1 : i32, i32, i32, i32
  }
  func.func @transform_1(%arg0: i32) -> (i32, i32) {
    %c0_i32 = arith.constant 0 : i32
    %c0_i32_0 = arith.constant 0 : i32
    %c0_i32_1 = arith.constant 0 : i32
    return %c0_i32, %c0_i32_0 : i32, i32
  }
  func.func @transform_2(%arg0: i32) -> (i32, i32, i32) {
    %c0_i32 = arith.constant 0 : i32
    %c0_i32_0 = arith.constant 0 : i32
    %c0_i32_1 = arith.constant 0 : i32
    return %arg0, %c0_i32, %c0_i32_0 : i32, i32, i32
  }
}

</mosaic_0001>

<bundles_post_ra>
// kernel: tpu_custom_call.1
= control target key start
LH: loop header
LB: loop body
LE: loop exit
PB: predicated region body
PF: predicated region fallthrough
CT: control target
= control target key end

     0   :  { %7 = vsyncpa [#allocation3], 0  ;;  %s4270_s0 = inlined_call_operand.vmem [shape: f32[2,4,18,18], index: 0, kind: input, shape index: {}]   ;;  %s4271_s1 = inlined_call_operand.vmem [shape: f32[8,36], index: 1, kind: input, shape index: {}]   ;;  %s4272_s2 = inlined_call_operand.hbm [shape: f32[2,8,256], index: 2, kind: output, shape index: {}]  }
   0x1   :  { %9 = vsyncpa [#allocation3 + $0x1], 0  ;;  %s2589_s9 = smov 0   ;;  %s2591_s10 = smov 0  }
   0x2   :  { %s2593_s11 = smov 0   ;;  %s2595_s12 = smov 0  }
   0x3 LB: > { %s2610_s13 = sadd.s32 4294967295, %s2559_s12   ;;  %s2420_s14 = sadd.s32 4294967294, %s2559_s12   ;;  %s2559_s12 = sphi %s2595_s12, %s4387_s12   ;;  %s2555_s11 = sphi %s2593_s11, %s4386_s11   ;;  %s2551_s10 = sphi %s2591_s10, %s4385_s10   ;;  %s2547_s9 = sphi %s2589_s9, %s4384_s9  }
   0x4   : > { %s2614_s15 = sadd.s32 1, %s2559_s12   ;;  %s69_s16 = sadd.s32 1, %s2555_s11 }
   0x5   : > { %s66_s17 = ssub.s32 %s2559_s12, %s2614_s15  ;;  %p79_p0 = scmp.ne.s32.totalorder %s2555_s11, %s2551_s10 }
   0x6   : > { %p67_p1 = scmp.eq.s32.totalorder %s66_s17, 0  ;;  %p80_p2 = scmp.eq.s32.totalorder %s2610_s13, 1 }
   0x7   : > { %p85_p3 = scmp.ne.s32.totalorder %s2551_s10, %s2547_s9  ;;  %p86_p4 = scmp.eq.s32.totalorder %s2420_s14, 1 }
   0x8   : > { %s2625_s18 = scalar_select %p67_p1, %s2555_s11, %s69_s16  }
   0x9   : > { %p2627_p5 = por %p80_p2, %p79_p0  ;;  %p2631_p6 = por %p86_p4, %p85_p3 }
   0xa   : > { %p2423_p7 = scmp.ge.s32.totalorder %s2559_s12, 1  ;;  %p115_p8 = scmp.lt.s32.totalorder %s2559_s12, 3 }
   0xc   : > { %p116_p9 = pnand %p2423_p7, %p115_p8 }
   0xe   : > { %119 = sbr.rel (%p116_p9) target bundleno = 753 (0x2f1), region = 28 }
  0x13   : > { %p137_p10 = scmp.lt.s32.totalorder %s2610_s13, 1  ;;  %v4273_v0 = vmov 0.0   ;;  %v2562_v1 = vmov 1983009808   ;;  %v160_v3 = vlaneseq  ;;  %v2563_v4 = vmov 1934713408  }
  0x14   : > { %2337 = vmatprep.mubr.f32.mxu0 %v4273_v0  ;;  %v158_v2 = vunpack.c.l.s4 %v2562_v1  ;;  %v190_v5 = vunpack.c.l.s4 %v2563_v4  ;;  %vm1535_vm0 = vcmask 1045504   ;;  %s2564_s26 = smov 127   ;;  %vm840_vm1 = vcmask 1046528   ;;  %s2565_s27 = smov 64  }
  0x15   : > { %s138_s21 = scalar_select %p137_p10, %s2610_s13, 1  ;;  %v161_v7 = vshrl.u32 %v160_v3, 7  ;;  %vm347_vm2 = vcmask 130048   ;;  %vm349_vm3 = vcmask 261120   ;;  %vm351_vm4 = vcmask 392192  }
  0x16   : > { %v159_v6 = vunpack.c.0.s8 %v158_v2  ;;  %v191_v21 = vunpack.c.0.s8 %v190_v5  ;;  %s2566_s28 = smov 32   ;;  %s2567_s29 = smov 48   ;;  %vm355_vm5 = vcmask 654336   ;;  %vm353_vm6 = vcmask 523264  }
  0x17   : > { %s2435_s22 = smul.u32 96, %s138_s21  ;;  %s2568_s30 = smov 16   ;;  %vm357_vm7 = vcmask 785408   ;;  %vm359_vm8 = vcmask 916480   ;;  %vm2254_vm9 = vcmask 1043456   ;;  %vm2263_vm10 = vcmask 293888  }
  0x18   : > { %v2677_v23 = vsub.s32 %v159_v6, %v161_v7  ;;  %v2717_v40 = vsub.s32 %v191_v21, %v161_v7  ;;  %s2569_s3 = smov 126   ;;  %s2570_s4 = smov 80  }
  0x19   : > { %s2643_s25 = scalar_lea.vmem %s4270_s0, %s2435_s22  ;;  %s2571_s5 = smov 96  }
  0x1a   : > { %v2646_v8 = vld [vmem:[%s2643_s25 + $0x20] sm:$0xff]  ;;  %v2649_v9 = vld [vmem:[%s2643_s25 + $0x28] sm:$0x3]  ;;  %v2657_v13 = vld [vmem:[%s2643_s25 + $0x10] sm:$0x3]  ;;  %s2572_s6 = smov 112  }
  0x1b   : > { %4303 = vst [vmem:[#allocation5_spill] sm:$0xff] %v2646_v8  ;;  %v2652_v10 = vld [vmem:[%s2643_s25 + $0x8] sm:$0xff]  ;;  %v1542_v11 = vrot.slane %v2646_v8, 2  ;;  %v1544_v12 = vrot.slane %v2649_v9, 2  ;;  %v2661_v15 = vld [vmem:[%s2643_s25 + $0x50] sm:$0xff]  ;;  %v1539_v16 = vrot.slane %v2657_v13, 2 }
  0x1c   : > { %4304 = vst [vmem:[#allocation6_spill] sm:$0xff] %v2652_v10  ;;  %v1537_v14 = vrot.slane %v2652_v10, 2  ;;  %4305 = vst [vmem:[#allocation7_spill] sm:$0xff] %v2661_v15  ;;  %v2665_v17 = vld [vmem:[%s2643_s25 + $0x58] sm:$0x3]  ;;  %v1552_v18 = vrot.slane %v2661_v15, 2 }
  0x1d   : > { %v2669_v19 = vld [vmem:[%s2643_s25 + $0x38] sm:$0xff]  ;;  %v2675_v22 = vsel %vm1535_vm0, %v1542_v11, %v1544_v12  ;;  %v1554_v24 = vrot.slane %v2665_v17, 2  ;;  %v2681_v25 = vld [vmem:[%s2643_s25 + $0x40] sm:$0x3]  ;;  %v2695_v31 = vld [vmem:[%s2643_s25 + $0x30] sm:$0xff]  ;;  %v847_v48 = vrot.slane %v2646_v8, 1 }
  0x1e   : > { %v2672_v20 = vld [vmem:[%s2643_s25 + $0x18] sm:$0xff]  ;;  %v1547_v26 = vrot.slane %v2669_v19, 2  ;;  %v2685_v27 = vld [vmem:[%s2643_s25] sm:$0xff]  ;;  %1776 = vrot.lane.b32.xlu1 %v2675_v22, %s2564_s26  ;;  %v2690_v28 = vsel %vm1535_vm0, %v1537_v14, %v1539_v16  ;;  %v1549_v29 = vrot.slane %v2681_v25, 2  ;;  %v2698_v32 = vld [vmem:[%s2643_s25 + $0x48] sm:$0xff]  ;;  %v1546_v52 = vrot.slane %v2695_v31, 2 }
  0x1f   : > { %v1541_v30 = vrot.slane %v2672_v20, 2  ;;  %1772 = vrot.lane.b32.xlu0 %v2690_v28, %s2564_s26  ;;  %v2703_v33 = vsel %vm1535_vm0, %v1552_v18, %v1554_v24  ;;  %v1536_v34 = vrot.slane %v2685_v27, 2  ;;  %v156_v35 = vcombine.high %v2685_v27, %v2695_v31  ;;  %s134_s14 = sand.u32 1, %s2551_s10   ;;  %s2434_s22 = sshll.u32 %s2610_s13, 8 }
  0x20   : > { %v172_v36 = vcombine.high %v2672_v20, %v2698_v32  ;;  %v1648_v37 = vcombine.low %v2675_v22, %v2703_v33  ;;  %v1649_v38 = vcombine.high %v2675_v22, %v2703_v33  ;;  %v2715_v39 = vsel %vm1535_vm0, %v1547_v26, %v1549_v29  ;;  %s2424_s16 = sshll.u32 %s134_s14, 4  ;;  %s2573_s13 = smov [#allocation2]  }
  0x21   : > { %v1632_v41 = vcombine.low %v2690_v28, %v2715_v39  ;;  %v1633_v42 = vcombine.high %v2690_v28, %v2715_v39  ;;  %v2724_v43 = vrot.slane %v156_v35, %v2677_v23  ;;  %v155_v45 = vcombine.low %v2685_v27, %v2695_v31  ;;  %s136_s17 = scalar_lea.vmem [#allocation2], %s2424_s16 }
  0x22   : > { %v2727_v44 = vrot.slane %v172_v36, %v2677_v23  ;;  %1784 = vrot.lane.b32.xlu1 %v2703_v33, %s2564_s26  ;;  %v171_v46 = vcombine.low %v2672_v20, %v2698_v32  ;;  %v1551_v47 = vrot.slane %v2698_v32, 2  ;;  %v2740_v49 = vsel %vm1535_vm0, %v1541_v30, %v1542_v11  ;;  %s2361_s21 = sshll.u32 %s136_s17, 4  ;;  %s4232_s21 = int_to_ptr.vmem [resolvable:$true] %s2361_s21 }
  0x23   : > { %4306 = vst [vmem:[#allocation8_spill] sm:$0xff] %v2724_v43  ;;  %1780 = vrot.lane.b32.xlu0 %v2715_v39, %s2564_s26  ;;  %v2743_v50 = vsel %vm1535_vm0, %v1536_v34, %v1537_v14  ;;  %v163_v53 = vrot.slane %v155_v45, %v2677_v23  ;;  %v849_v56 = vrot.slane %v2649_v9, 1  ;;  %v2762_v60 = vsel %vm1535_vm0, %v1546_v52, %v1547_v26 }
  0x24   : > { %4307 = vst [vmem:[#allocation9_spill] sm:$0xff] %v2727_v44  ;;  %v203_v51 = vcombine.low %v2724_v43, %v2727_v44  ;;  %v179_v54 = vrot.slane %v171_v46, %v2677_v23  ;;  %v2751_v55 = vsel %vm1535_vm0, %v1551_v47, %v1552_v18  ;;  %v1564_v63 = vcombine.low %v2743_v50, %v2762_v60 }
  0x25   : > { %v1580_v58 = vcombine.low %v2740_v49, %v2751_v55  ;;  %v1581_v59 = vcombine.high %v2740_v49, %v2751_v55  ;;  %v1565_v1 = vcombine.high %v2743_v50, %v2762_v60  ;;  %v2771_v2 = vrot.slane %v1648_v37, %v2677_v23 }
  0x26   : > { %v2755_v57 = vrot.slane %v203_v51, %v2717_v40  ;;  %1774 = vrot.lane.b32.xlu1 %v2740_v49, %s2564_s26  ;;  %v188_v61 = vcombine.high %v163_v53, %v179_v54  ;;  %v187_v62 = vcombine.low %v163_v53, %v179_v54  ;;  %v2774_v3 = vrot.slane %v1632_v41, %v2677_v23 }
  0x27   : > { %1770 = vrot.lane.b32.xlu0 %v2743_v50, %s2564_s26  ;;  %v842_v4 = vrot.slane %v2652_v10, 1  ;;  %v2784_v7 = vrot.slane %v1580_v58, %v2677_v23  ;;  %v2787_v9 = vsel %vm840_vm1, %v847_v48, %v849_v56  ;;  %v844_v11 = vrot.slane %v2657_v13, 1 }
  0x28   : > { %4308 = vst [vmem:[#allocation10_spill] sm:$0xff] %v2755_v57  ;;  %v202_v5 = vrot.slane %v188_v61, %v2717_v40  ;;  %v2781_v6 = vrot.slane %v187_v62, %v2717_v40  ;;  %v857_v12 = vrot.slane %v2661_v15, 1  ;;  %v859_v14 = vrot.slane %v2665_v17, 1 }
  0x29   : > { %v852_v16 = vrot.slane %v2669_v19, 1  ;;  %v2797_v21 = vrot.slane %v1564_v63, %v2677_v23  ;;  %v854_v24 = vrot.slane %v2681_v25, 1  ;;  %v846_v26 = vrot.slane %v2672_v20, 1 }
  0x2a   : > { %4309 = vst [vmem:[#allocation11_spill] sm:$0xff] %v2781_v6  ;;  %304 = vrot.lane.b32.xlu1 %v2755_v57, %s2565_s27  ;;  %v220_v18 = vcombine.high %v202_v5, %v4273_v0  ;;  %v219_v13 = vcombine.high %v2781_v6, %v4273_v0  ;;  %v2805_v17 = vsel %vm840_vm1, %v842_v4, %v844_v11  ;;  %v856_v30 = vrot.slane %v2698_v32, 1 }
  0x2b   : > { %296 = vrot.lane.b32.xlu0 %v202_v5, %s2566_s28  ;;  %v2808_v29 = vsel %vm840_vm1, %v857_v12, %v859_v14  ;;  %v2816_v35 = vsel %vm840_vm1, %v852_v16, %v854_v24  ;;  %v841_v36 = vrot.slane %v2685_v27, 1  ;;  %v2824_v45 = vsel %vm840_vm1, %v846_v26, %v847_v48 }
  0x2c   : > { %v953_v34 = vcombine.low %v2787_v9, %v2808_v29  ;;  %v954_v25 = vcombine.high %v2787_v9, %v2808_v29  ;;  %v937_v37 = vcombine.low %v2805_v17, %v2816_v35  ;;  %v938_v41 = vcombine.high %v2805_v17, %v2816_v35 }
  0x2d   : > { %v2827_v46 = vsel %vm840_vm1, %v856_v30, %v857_v12  ;;  %v851_v52 = vrot.slane %v2695_v31, 1  ;;  %v1596_v48 = vcombine.low %v2797_v21, %v2784_v7  ;;  %v2839_v53 = vsel %vm840_vm1, %v841_v36, %v842_v4 }
  0x2e   : > { %300 = vrot.lane.b32.xlu1 %v220_v18, %s2567_s29  ;;  %v885_v47 = vcombine.low %v2824_v45, %v2827_v46  ;;  %v1664_v56 = vcombine.low %v2774_v3, %v2771_v2  ;;  %v1665_v58 = vcombine.high %v2774_v3, %v2771_v2  ;;  %v2889_v63 = vrot.slane %v953_v34, %v2677_v23 }
  0x2f   : > { %292 = vrot.lane.b32.xlu0 %v219_v13, %s2568_s30  ;;  %v2842_v54 = vsel %vm840_vm1, %v851_v52, %v852_v16  ;;  %v2892_v2 = vrot.slane %v937_v37, %v2677_v23  ;;  %v2944_v16 = vrot.slane %v1633_v42, %v2677_v23  ;;  %v2950_v18 = vrot.slane %v1649_v38, %v2677_v23 }
  0x30   : > { %v869_v61 = vcombine.low %v2839_v53, %v2842_v54  ;;  %v2921_v11 = vrot.slane %v885_v47, %v2677_v23  ;;  %v2982_v38 = vrot.slane %v1665_v58, %v2717_v40  ;;  %v2999_v42 = vrot.slane %v1565_v1, %v2677_v23 }
  0x32   : > { %1782 = vrot.lane.b32.xlu1 %v2751_v55, %s2564_s26  ;;  %v2924_v12 = vrot.slane %v869_v61, %v2677_v23 }
  0x33   : > { %1778 = vrot.lane.b32.xlu0 %v2762_v60, %s2564_s26 }
  0x36   : > { %2006 = vrot.lane.b32.xlu1 %v2675_v22, %s2569_s3  ;;  %v2965_v22 = vrot.slane %v1664_v56, %v2717_v40  ;;  %v3036_v56 = vrot.slane %v938_v41, %v2677_v23 }
  0x37   : > { %2002 = vrot.lane.b32.xlu0 %v2690_v28, %s2569_s3  ;;  %v2970_v28 = vrot.slane %v1596_v48, %v2717_v40  ;;  %v3030_v48 = vrot.slane %v954_v25, %v2677_v23 }
  0x38   : > { %4310 = vst [vmem:[#allocation12_spill] sm:$0xff] %v2965_v22 }
  0x39   : > { %4311 = vst [vmem:[#allocation13_spill] sm:$0xff] %v2970_v28 }
  0x3a   : > { %2014 = vrot.lane.b32.xlu1 %v2703_v33, %s2569_s3  ;;  %v1696_v33 = vcombine.high %v2965_v22, %v4273_v0 }
  0x3b   : > { %2010 = vrot.lane.b32.xlu0 %v2715_v39, %s2569_s3 }
  0x3e   : > { %1311 = vrot.lane.b32.xlu1 %v2787_v9, %s2569_s3 }
  0x3f   : > { %1307 = vrot.lane.b32.xlu0 %v2805_v17, %s2569_s3 }
  0x42   : > { %1319 = vrot.lane.b32.xlu1 %v2808_v29, %s2569_s3 }
  0x43   : > { %1315 = vrot.lane.b32.xlu0 %v2816_v35, %s2569_s3 }
  0x46   : > { %2004 = vrot.lane.b32.xlu1 %v2740_v49, %s2569_s3 }
  0x47   : > { %2000 = vrot.lane.b32.xlu0 %v2743_v50, %s2569_s3 }
  0x4a   : > { %2012 = vrot.lane.b32.xlu1 %v2751_v55, %s2569_s3 }
  0x4b   : > { %2008 = vrot.lane.b32.xlu0 %v2762_v60, %s2569_s3 }
  0x4e   : > { %1309 = vrot.lane.b32.xlu1 %v2824_v45, %s2569_s3 }
  0x4f   : > { %1305 = vrot.lane.b32.xlu0 %v2839_v53, %s2569_s3 }
  0x52   : > { %1317 = vrot.lane.b32.xlu1 %v2827_v46, %s2569_s3 }
  0x53   : > { %1313 = vrot.lane.b32.xlu0 %v2842_v54, %s2569_s3 }
  0x56   : > { %1081 = vrot.lane.b32.xlu1 %v2787_v9, %s2564_s26 }
  0x57   : > { %1077 = vrot.lane.b32.xlu0 %v2805_v17, %s2564_s26 }
  0x5a   : > { %1089 = vrot.lane.b32.xlu1 %v2808_v29, %s2564_s26 }
  0x5b   : > { %1085 = vrot.lane.b32.xlu0 %v2816_v35, %s2564_s26 }
  0x5e   : > { %1079 = vrot.lane.b32.xlu1 %v2824_v45, %s2564_s26 }
  0x5f   : > { %1075 = vrot.lane.b32.xlu0 %v2839_v53, %s2564_s26 }
  0x62   : > { %1087 = vrot.lane.b32.xlu1 %v2827_v46, %s2564_s26 }
  0x63   : > { %1083 = vrot.lane.b32.xlu0 %v2842_v54, %s2564_s26 }
  0x66   : > { %382 = vrot.lane.b32.xlu1 %v2646_v8, %s2564_s26 }
  0x67   : > { %378 = vrot.lane.b32.xlu0 %v2652_v10, %s2564_s26 }
  0x6a   : > { %390 = vrot.lane.b32.xlu1 %v2661_v15, %s2564_s26 }
  0x6b   : > { %386 = vrot.lane.b32.xlu0 %v2669_v19, %s2564_s26 }
  0x6e   : > { %612 = vrot.lane.b32.xlu1 %v2646_v8, %s2569_s3 }
  0x6f   : > { %608 = vrot.lane.b32.xlu0 %v2652_v10, %s2569_s3 }
  0x72   : > { %620 = vrot.lane.b32.xlu1 %v2661_v15, %s2569_s3 }
  0x73   : > { %616 = vrot.lane.b32.xlu0 %v2669_v19, %s2569_s3 }
  0x76   : > { %380 = vrot.lane.b32.xlu1 %v2672_v20, %s2564_s26 }
  0x77   : > { %376 = vrot.lane.b32.xlu0 %v2685_v27, %s2564_s26 }
  0x7a   : > { %388 = vrot.lane.b32.xlu1 %v2698_v32, %s2564_s26 }
  0x7b   : > { %384 = vrot.lane.b32.xlu0 %v2695_v31, %s2564_s26  ;;  %s2347_s26 = scalar_lea.sflag [#allocation3], %s134_s14 }
  0x7e   : > { %610 = vrot.lane.b32.xlu1 %v2672_v20, %s2569_s3  ;;  %v1628_v20 = vcombine.high %v2970_v28, %v4273_v0 }
  0x7f   : > { %606 = vrot.lane.b32.xlu0 %v2685_v27, %s2569_s3 }
  0x82   : > { %618 = vrot.lane.b32.xlu1 %v2698_v32, %s2569_s3 }
  0x83   : > { %614 = vrot.lane.b32.xlu0 %v2695_v31, %s2569_s3  ;;  %v2993_v31 = vrot.slane %v1581_v59, %v2677_v23 }
  0x86   : > { %1729 = vrot.lane.b32.xlu1 %v1696_v33, %s2568_s30 }
  0x87   : > { %1701 = vrot.lane.b32.xlu0 %v1628_v20, %s2568_s30 }
  0x8a   : > { %1733 = vrot.lane.b32.xlu1 %v2982_v38, %s2566_s28 }
  0x90   : > { %v1777_v32 = vpop.permute.xlu1 %1776 }
  0x91   : > { %v1773_v39 = vpop.permute.xlu0 %1772 }
  0x94   : > { %v1785_v26 = vpop.permute.xlu1 %1784 }
  0x95   : > { %v1878_v13 = vcombine.low %v1777_v32, %v1785_v26  ;;  %v1781_v30 = vpop.permute.xlu0 %1780  ;;  %v1879_v4 = vcombine.high %v1777_v32, %v1785_v26 }
  0x96   : > { %v1862_v34 = vcombine.low %v1773_v39, %v1781_v30  ;;  %v1863_v3 = vcombine.high %v1773_v39, %v1781_v30 }
  0x97   : > { %v3002_v36 = vrot.slane %v1878_v13, %v2677_v23  ;;  %v3092_v32 = vrot.slane %v1879_v4, %v2677_v23 }
  0x98   : > { %v3007_v49 = vrot.slane %v1862_v34, %v2677_v23  ;;  %v3009_v55 = vpop.permute.xlu1 %1774  ;;  %v3095_v39 = vrot.slane %v1863_v3, %v2677_v23 }
  0x99   : > { %v3011_v59 = vpop.permute.xlu0 %1770 }
  0x9a   : > { %v1895_v50 = vcombine.high %v3007_v49, %v3002_v36  ;;  %v1910_v4 = vcombine.low %v3095_v39, %v3092_v32 }
  0x9c   : > { %v3015_v60 = vpop.permute.xlu1 %304  ;;  %v3018_v1 = vrot.slane %v1895_v50, %v2717_v40  ;;  %v3122_v44 = vrot.slane %v1910_v4, %v2717_v40 }
  0x9d   : > { %4312 = vst [vmem:[#allocation14_spill] sm:$0xff] %v3015_v60  ;;  %v3020_v47 = vpop.permute.xlu0 %296 }
  0x9e   : > { %4313 = vst [vmem:[#allocation15_spill] sm:$0xff] %v3020_v47  ;;  %1963 = vrot.lane.b32.xlu0 %v3018_v1, %s2566_s28 }
  0xa0   : > { %v3024_v52 = vpop.permute.xlu1 %300 }
  0xa1   : > { %4314 = vst [vmem:[#allocation16_spill] sm:$0xff] %v3024_v52  ;;  %v3038_v58 = vpop.permute.xlu0 %292 }
  0xa2   : > { %4315 = vst [vmem:[#allocation17_spill] sm:$0xff] %v3038_v58 }
  0xa4   : > { %v3040_v61 = vpop.permute.xlu1 %1782 }
  0xa5   : > { %v1810_v33 = vcombine.low %v3009_v55, %v3040_v61  ;;  %v3044_v20 = vpop.permute.xlu0 %1778 }
  0xa6   : > { %v1794_v29 = vcombine.low %v3011_v59, %v3044_v20 }
  0xa7   : > { %v1818_v25 = vrot.slane %v1810_v33, %v2677_v23 }
  0xa8   : > { %v1802_v17 = vrot.slane %v1794_v29, %v2677_v23  ;;  %v3052_v35 = vpop.permute.xlu1 %2006 }
  0xa9   : > { %v3054_v41 = vpop.permute.xlu0 %2002 }
  0xaa   : > { %v1827_v13 = vcombine.high %v1802_v17, %v1818_v25  ;;  %v1826_v52 = vcombine.low %v1802_v17, %v1818_v25  ;;  %v1894_v25 = vcombine.low %v3007_v49, %v3002_v36 }
  0xac   : > { %v3056_v34 = vpop.permute.xlu1 %2014  ;;  %v3059_v50 = vrot.slane %v1827_v13, %v2717_v40  ;;  %v3125_v57 = vrot.slane %v1826_v52, %v2717_v40  ;;  %v4320_v52 = vcombine.high %v2824_v45, %v2827_v46 }
  0xad   : > { %v2108_v9 = vcombine.low %v3052_v35, %v3056_v34  ;;  %v3063_v37 = vpop.permute.xlu0 %2010 }
  0xae   : > { %v2092_v33 = vcombine.low %v3054_v41, %v3063_v37  ;;  %1935 = vrot.lane.b32.xlu0 %v3059_v50, %s2566_s28  ;;  %4316 = vst [vmem:[#allocation18_spill] sm:$0xff] %v3125_v57 }
  0xaf   : > { %v2116_v29 = vrot.slane %v2108_v9, %v2677_v23 }
  0xb0   : > { %v2100_v27 = vrot.slane %v2092_v33, %v2677_v23  ;;  %v3071_v24 = vpop.permute.xlu1 %1311 }
  0xb1   : > { %v3073_v14 = vpop.permute.xlu0 %1307 }
  0xb2   : > { %v2125_v5 = vcombine.high %v2100_v27, %v2116_v29  ;;  %v2124_v17 = vcombine.low %v2100_v27, %v2116_v29  ;;  %v3133_v27 = vrot.slane %v1894_v25, %v2717_v40  ;;  %v4319_v29 = vmov 0.0  }
  0xb3   : > { %v1858_v4 = vcombine.high %v3125_v57, %v4319_v29  ;;  %v4321_v25 = vcombine.high %v2839_v53, %v2842_v54 }
  0xb4   : > { %v3077_v62 = vpop.permute.xlu1 %1319  ;;  %v3080_v51 = vrot.slane %v2125_v5, %v2717_v40  ;;  %v3130_v36 = vrot.slane %v2124_v17, %v2717_v40  ;;  %4318 = vst [vmem:[#allocation20_spill] sm:$0xff] %v3133_v27  ;;  %v1926_v46 = vcombine.high %v3133_v27, %v4319_v29 }
  0xb5   : > { %v1413_v9 = vcombine.low %v3071_v24, %v3077_v62  ;;  %v3084_v0 = vpop.permute.xlu0 %1315  ;;  %v3150_v15 = vrot.slane %v4321_v25, %v2677_v23 }
  0xb6   : > { %v1397_v33 = vcombine.low %v3073_v14, %v3084_v0  ;;  %2193 = vrot.lane.b32.xlu1 %v3080_v51, %s2566_s28  ;;  %4317 = vst [vmem:[#allocation19_spill] sm:$0xff] %v3130_v36 }
  0xb7   : > { %v1421_v13 = vrot.slane %v1413_v9, %v2677_v23 }
  0xb8   : > { %v1405_v5 = vrot.slane %v1397_v33, %v2677_v23  ;;  %v3098_v26 = vpop.permute.xlu1 %2004 }
  0xb9   : > { %v3100_v30 = vpop.permute.xlu0 %2000 }
  0xba   : > { %v1430_v60 = vcombine.high %v1405_v5, %v1421_v13  ;;  %v1429_v8 = vcombine.low %v1405_v5, %v1421_v13 }
  0xbc   : > { %v3102_v47 = vpop.permute.xlu1 %2012  ;;  %v3105_v6 = vrot.slane %v1430_v60, %v2717_v40  ;;  %v3163_v53 = vrot.slane %v1429_v8, %v2717_v40  ;;  %v1927_v8 = vcombine.high %v3018_v1, %v4319_v29 }
  0xbd   : > { %v2040_v3 = vcombine.low %v3098_v26, %v3102_v47  ;;  %v3111_v9 = vpop.permute.xlu0 %2008 }
  0xbe   : > { %v2024_v33 = vcombine.low %v3100_v30, %v3111_v9  ;;  %1498 = vrot.lane.b32.xlu1 %v3105_v6, %s2566_s28  ;;  %4322 = vst [vmem:[#allocation21_spill] sm:$0xff] %v3163_v53 }
  0xbf   : > { %v2048_v60 = vrot.slane %v2040_v3, %v2677_v23 }
  0xc0   : > { %v2032_v58 = vrot.slane %v2024_v33, %v2677_v23  ;;  %v1310_v43 = vpop.permute.xlu1 %1309  ;;  %v3144_v33 = vrot.slane %v4320_v52, %v2677_v23 }
  0xc1   : > { %v1306_v28 = vpop.permute.xlu0 %1305 }
  0xc2   : > { %1971 = vrot.lane.b32.xlu1 %v3122_v44, %s2565_s27  ;;  %v2057_v22 = vcombine.high %v2032_v58, %v2048_v60  ;;  %v2056_v54 = vcombine.low %v2032_v58, %v2048_v60 }
  0xc4   : > { %v1318_v49 = vpop.permute.xlu1 %1317  ;;  %v3138_v3 = vrot.slane %v2057_v22, %v2717_v40 }
  0xc5   : > { %v1345_v13 = vcombine.low %v1310_v43, %v1318_v49  ;;  %v1346_v5 = vcombine.high %v1310_v43, %v1318_v49  ;;  %v1314_v17 = vpop.permute.xlu0 %1313  ;;  %v2156_v43 = vcombine.high %v3130_v36, %v4319_v29 }
  0xc6   : > { %v1329_v10 = vcombine.low %v1306_v28, %v1314_v17  ;;  %v1330_v57 = vcombine.high %v1306_v28, %v1314_v17  ;;  %1931 = vrot.lane.b32.xlu1 %v1858_v4, %s2568_s30  ;;  %2165 = vrot.lane.b32.xlu0 %v3138_v3, %s2566_s28 }
  0xc7   : > { %v3156_v45 = vrot.slane %v1346_v5, %v2677_v23  ;;  %v1353_v22 = vrot.slane %v1345_v13, %v2677_v23 }
  0xc8   : > { %v1337_v28 = vrot.slane %v1329_v10, %v2677_v23  ;;  %v3168_v49 = vrot.slane %v1330_v57, %v2677_v23  ;;  %v3170_v4 = vpop.permute.xlu1 %1081  ;;  %v1461_v10 = vcombine.high %v3163_v53, %v4319_v29  ;;  %v3185_v57 = vrot.slane %v2056_v54, %v2717_v40 }
  0xc9   : > { %v3172_v52 = vpop.permute.xlu0 %1077  ;;  %v2157_v54 = vcombine.high %v3080_v51, %v4319_v29 }
  0xca   : > { %2189 = vrot.lane.b32.xlu1 %v2156_v43, %s2568_s30  ;;  %1959 = vrot.lane.b32.xlu0 %v1926_v46, %s2568_s30  ;;  %v1361_v58 = vcombine.low %v1337_v28, %v1353_v22  ;;  %4323 = vst [vmem:[#allocation22_spill] sm:$0xff] %v3185_v57  ;;  %v2088_v5 = vcombine.high %v3185_v57, %v4319_v29 }
  0xcb   : > { %v4326_v57 = vcombine.low %v2892_v2, %v2889_v63 }
  0xcc   : > { %v3180_v60 = vpop.permute.xlu1 %1089  ;;  %v3208_v13 = vrot.slane %v1361_v58, %v2717_v40 }
  0xcd   : > { %v1183_v17 = vcombine.low %v3170_v4, %v3180_v60  ;;  %v3191_v25 = vpop.permute.xlu0 %1085 }
  0xce   : > { %v1167_v1 = vcombine.low %v3172_v52, %v3191_v25  ;;  %1967 = vrot.lane.b32.xlu1 %v1927_v8, %s2567_s29  ;;  %1494 = vrot.lane.b32.xlu0 %v1461_v10, %s2568_s30  ;;  %4324 = vst [vmem:[#allocation23_spill] sm:$0xff] %v3208_v13  ;;  %v1393_v51 = vcombine.high %v3208_v13, %v4319_v29 }
  0xcf   : > { %v3198_v43 = vrot.slane %v1183_v17, %v2677_v23  ;;  %v1811_v13 = vcombine.high %v3009_v55, %v3040_v61 }
  0xd0   : > { %v3201_v46 = vrot.slane %v1167_v1, %v2677_v23  ;;  %v3210_v53 = vpop.permute.xlu1 %1079 }
  0xd1   : > { %v3212_v8 = vpop.permute.xlu0 %1075 }
  0xd2   : > { %v1199_v10 = vcombine.low %v3201_v46, %v3198_v43  ;;  %2197 = vrot.lane.b32.xlu1 %v2157_v54, %s2567_s29  ;;  %2161 = vrot.lane.b32.xlu0 %v2088_v5, %s2568_s30  ;;  %v3232_v54 = vrot.slane %v4326_v57, %v2717_v40  ;;  %v1462_v57 = vcombine.high %v3105_v6, %v4319_v29 }
  0xd4   : > { %v3221_v17 = vrot.slane %v1199_v10, %v2717_v40  ;;  %4327 = vst [vmem:[#allocation25_spill] sm:$0xff] %v3232_v54  ;;  %v3234_v5 = vpop.permute.xlu1 %1087  ;;  %v1859_v10 = vcombine.high %v3059_v50, %v4319_v29 }
  0xd5   : > { %v3223_v1 = vpop.permute.xlu0 %1083 }
  0xd6   : > { %4325 = vst [vmem:[#allocation24_spill] sm:$0xff] %v3221_v17  ;;  %1466 = vrot.lane.b32.xlu0 %v1393_v51, %s2568_s30  ;;  %v1231_v58 = vcombine.high %v3221_v17, %v4319_v29  ;;  %v2109_v51 = vcombine.high %v3052_v35, %v3056_v34  ;;  %v2093_v17 = vcombine.high %v3054_v41, %v3063_v37 }
  0xd7   : > { %v1795_v35 = vcombine.high %v3011_v59, %v3044_v20  ;;  %v1697_v37 = vcombine.high %v2982_v38, %v4319_v29  ;;  %v1362_v41 = vcombine.high %v1337_v28, %v1353_v22  ;;  %v1928_v20 = vcombine.high %v3122_v44, %v4319_v29 }
  0xd8   : > { %1264 = vrot.lane.b32.xlu1 %v1231_v58, %s2568_s30  ;;  %v1001_v58 = vcombine.high %v3232_v54, %v4319_v29  ;;  %v3252_v50 = vpop.permute.xlu1 %382  ;;  %v3262_v6 = vrot.slane %v2109_v51, %v2677_v23  ;;  %v3265_v34 = vrot.slane %v2093_v17, %v2677_v23  ;;  %v4328_v22 = vcombine.high %v2797_v21, %v2784_v7 }
  0xd9   : > { %v3250_v36 = vpop.permute.xlu0 %378  ;;  %v3272_v55 = vrot.slane %v1795_v35, %v2677_v23  ;;  %v1376_v59 = vrot.slane %v1362_v41, %v2717_v40  ;;  %v1115_v51 = vcombine.low %v3210_v53, %v3234_v5  ;;  %v1099_v44 = vcombine.low %v3212_v8, %v3223_v1 }
  0xda   : > { %1939 = vrot.lane.b32.xlu0 %v1859_v10, %s2567_s29  ;;  %v3269_v10 = vrot.slane %v1811_v13, %v2677_v23  ;;  %v1611_v28 = vrot.slane %v4328_v22, %v2717_v40  ;;  %v2140_v13 = vcombine.low %v3265_v34, %v3262_v6  ;;  %v1414_v7 = vcombine.high %v3071_v24, %v3077_v62 }
  0xdb   : > { %v1398_v21 = vcombine.high %v3073_v14, %v3084_v0  ;;  %v3309_v41 = vrot.slane %v1115_v51, %v2677_v23  ;;  %v4329_v0 = vcombine.high %v2892_v2, %v2889_v63  ;;  %v4330_v51 = vcombine.low %v2924_v12, %v2921_v11 }
  0xdc   : > { %1502 = vrot.lane.b32.xlu1 %v1462_v57, %s2567_s29  ;;  %v3278_v61 = vpop.permute.xlu1 %390  ;;  %v1842_v57 = vcombine.low %v3272_v55, %v3269_v10  ;;  %v3321_v24 = vrot.slane %v1414_v7, %v2677_v23  ;;  %v2089_v2 = vcombine.high %v3138_v3, %v4319_v29 }
  0xdd   : > { %v3276_v38 = vpop.permute.xlu0 %386  ;;  %v984_v14 = vrot.slane %v4329_v0, %v2717_v40  ;;  %v3324_v22 = vrot.slane %v1398_v21, %v2677_v23 }
  0xde   : > { %1034 = vrot.lane.b32.xlu0 %v1001_v58, %s2568_s30  ;;  %v2148_v58 = vrot.slane %v2140_v13, %v2717_v40  ;;  %v1850_v62 = vrot.slane %v1842_v57, %v2717_v40  ;;  %v1200_v13 = vcombine.high %v3201_v46, %v3198_v43 }
  0xdf   : > { %v1445_v21 = vcombine.low %v3324_v22, %v3321_v24 }
  0xe0   : > { %1737 = vrot.lane.b32.xlu1 %v1697_v37, %s2567_s29  ;;  %v3306_v37 = vpop.permute.xlu1 %612  ;;  %v1214_v43 = vrot.slane %v1200_v13, %v2717_v40 }
  0xe1   : > { %v3304_v35 = vpop.permute.xlu0 %608  ;;  %v1453_v13 = vrot.slane %v1445_v21, %v2717_v40  ;;  %v2041_v21 = vcombine.high %v3098_v26, %v3102_v47  ;;  %v1629_v26 = vcombine.high %v1611_v28, %v4319_v29 }
  0xe2   : > { %1470 = vrot.lane.b32.xlu0 %v1376_v59, %s2566_s28 }
  0xe4   : > { %1975 = vrot.lane.b32.xlu1 %v1928_v20, %s2570_s4  ;;  %v3312_v20 = vrot.slane %v1099_v44, %v2677_v23  ;;  %v3333_v44 = vrot.slane %v4330_v51, %v2717_v40  ;;  %v3342_v7 = vpop.permute.xlu1 %620 }
  0xe5   : > { %v3340_v57 = vpop.permute.xlu0 %616  ;;  %v714_v51 = vcombine.low %v3306_v37, %v3342_v7 }
  0xe6   : > { %1705 = vrot.lane.b32.xlu0 %v1611_v28, %s2566_s28  ;;  %4331 = vst [vmem:[#allocation26_spill] sm:$0xff] %v3333_v44  ;;  %v1131_v63 = vcombine.low %v3312_v20, %v3309_v41  ;;  %v933_v46 = vcombine.high %v3333_v44, %v4319_v29  ;;  %v698_v3 = vcombine.low %v3304_v35, %v3340_v57 }
  0xe7   : > { %v3371_v54 = vrot.slane %v714_v51, %v2677_v23  ;;  %v484_v51 = vcombine.low %v3252_v50, %v3278_v61  ;;  %v2158_v28 = vcombine.high %v2148_v58, %v4319_v29 }
  0xe8   : > { %2201 = vrot.lane.b32.xlu1 %v2148_v58, %s2565_s27  ;;  %v3352_v0 = vrot.slane %v1131_v63, %v2717_v40  ;;  %v4333_v63 = vcombine.low %v2944_v16, %v2950_v18  ;;  %v3368_v44 = vrot.slane %v698_v3, %v2677_v23  ;;  %v468_v3 = vcombine.low %v3250_v36, %v3276_v38 }
  0xea   : > { %1943 = vrot.lane.b32.xlu0 %v1850_v62, %s2565_s27  ;;  %4332 = vst [vmem:[#allocation27_spill] sm:$0xff] %v3352_v0  ;;  %v1688_v17 = vrot.slane %v4333_v63, %v2717_v40  ;;  %v3403_v63 = vrot.slane %v484_v51, %v2677_v23  ;;  %v3420_v51 = vpop.permute.xlu1 %380 }
  0xec   : > { %1038 = vrot.lane.b32.xlu1 %v984_v14, %s2566_s28 }
  0xee   : > { %2169 = vrot.lane.b32.xlu0 %v2089_v2, %s2567_s29  ;;  %v1163_v2 = vcombine.high %v3352_v0, %v4319_v29  ;;  %v2025_v0 = vcombine.high %v3100_v30, %v3111_v9  ;;  %v3394_v30 = vrot.slane %v2041_v21, %v2677_v23 }
  0xf0   : > { %1268 = vrot.lane.b32.xlu1 %v1214_v43, %s2566_s28  ;;  %v3397_v9 = vrot.slane %v2025_v0, %v2677_v23 }
  0xf2   : > { %1006 = vrot.lane.b32.xlu0 %v933_v46, %s2568_s30  ;;  %v1911_v46 = vcombine.high %v3095_v39, %v3092_v32  ;;  %v730_v32 = vcombine.low %v3368_v44, %v3371_v54  ;;  %v1394_v39 = vcombine.high %v1376_v59, %v4319_v29 }
  0xf4   : > { %1506 = vrot.lane.b32.xlu1 %v1453_v13, %s2565_s27  ;;  %v1925_v47 = vrot.slane %v1911_v46, %v2717_v40  ;;  %v3407_v59 = vrot.slane %v730_v32, %v2717_v40  ;;  %v1860_v46 = vcombine.high %v1850_v62, %v4319_v29  ;;  %v1002_v32 = vcombine.high %v984_v14, %v4319_v29  ;;  %v3428_v62 = vpop.permute.xlu0 %376 }
  0xf5   : > { %v4336_v14 = vcombine.high %v2924_v12, %v2921_v11  ;;  %v1698_v11 = vcombine.high %v1688_v17, %v4319_v29 }
  0xf6   : > { %1236 = vrot.lane.b32.xlu0 %v1163_v2, %s2568_s30  ;;  %v3400_v2 = vrot.slane %v468_v3, %v2677_v23  ;;  %4334 = vst [vmem:[#allocation28_spill] sm:$0xff] %v3407_v59  ;;  %v762_v21 = vcombine.high %v3407_v59, %v4319_v29  ;;  %v2072_v3 = vcombine.low %v3397_v9, %v3394_v30 }
  0xf8   : > { %1741 = vrot.lane.b32.xlu1 %v1688_v17, %s2565_s27  ;;  %v500_v0 = vcombine.low %v3400_v2, %v3403_v63  ;;  %v2080_v58 = vrot.slane %v2072_v3, %v2717_v40  ;;  %v1132_v3 = vcombine.high %v3312_v20, %v3309_v41 }
  0xfa   : > { %1474 = vrot.lane.b32.xlu0 %v1394_v39, %s2567_s29  ;;  %v3426_v39 = vrot.slane %v500_v0, %v2717_v40  ;;  %v3442_v0 = vrot.slane %v4336_v14, %v2717_v40  ;;  %v3459_v12 = vrot.slane %v1132_v3, %v2717_v40  ;;  %v2141_v14 = vcombine.high %v3265_v34, %v3262_v6 }
  0xfb   : > { %v1929_v3 = vcombine.high %v1925_v47, %v4319_v29 }
  0xfc   : > { %1979 = vrot.lane.b32.xlu1 %v1925_v47, %s2571_s5  ;;  %4335 = vst [vmem:[#allocation29_spill] sm:$0xff] %v3426_v39 }
  0xfe   : > { %1709 = vrot.lane.b32.xlu0 %v1629_v26, %s2567_s29  ;;  %v532_v26 = vcombine.high %v3426_v39, %v4319_v29 }
 0x100   : > { %2205 = vrot.lane.b32.xlu1 %v2158_v28, %s2570_s4  ;;  %v3434_v28 = vpop.permute.xlu1 %388 }
 0x101   : > { %v416_v20 = vcombine.low %v3420_v51, %v3434_v28 }
 0x102   : > { %1947 = vrot.lane.b32.xlu0 %v1860_v46, %s2570_s4  ;;  %v1232_v46 = vcombine.high %v1214_v43, %v4319_v29  ;;  %v1377_v43 = vcombine.low %v3168_v49, %v3156_v45 }
 0x103   : > { %v3496_v34 = vrot.slane %v416_v20, %v2677_v23 }
 0x104   : > { %795 = vrot.lane.b32.xlu1 %v762_v21, %s2568_s30  ;;  %v3444_v21 = vpop.permute.xlu0 %384  ;;  %v3471_v17 = vrot.slane %v1377_v43, %v2717_v40  ;;  %v1843_v43 = vcombine.high %v3272_v55, %v3269_v10  ;;  %v501_v10 = vcombine.high %v3400_v2, %v3403_v63  ;;  %v3506_v55 = vrot.slane %v2141_v14, %v2717_v40 }
 0x105   : > { %v400_v41 = vcombine.low %v3428_v62, %v3444_v21  ;;  %v1184_v2 = vcombine.high %v3170_v4, %v3180_v60  ;;  %v1168_v14 = vcombine.high %v3172_v52, %v3191_v25 }
 0x106   : > { %2173 = vrot.lane.b32.xlu0 %v2080_v58, %s2565_s27  ;;  %v1857_v63 = vrot.slane %v1843_v43, %v2717_v40 }
 0x107   : > { %v3491_v39 = vrot.slane %v400_v41, %v2677_v23  ;;  %v3537_v52 = vrot.slane %v1184_v2, %v2677_v23  ;;  %v3540_v60 = vrot.slane %v1168_v14, %v2677_v23  ;;  %v4345_v14 = vld [vmem:[#allocation6_spill] sm:$0xff] }
 0x108   : > { %1042 = vrot.lane.b32.xlu1 %v1002_v32, %s2567_s29  ;;  %v1463_v32 = vcombine.high %v1453_v13, %v4319_v29 }
 0x109   : > { %v432_v20 = vcombine.low %v3491_v39, %v3496_v34 }
 0x10a   : > { %565 = vrot.lane.b32.xlu0 %v532_v26, %s2568_s30  ;;  %v3452_v26 = vpop.permute.xlu1 %610 }
 0x10b   : > { %4337 = vst [vmem:[#allocation30_spill] sm:$0xff] %v3452_v26  ;;  %v3534_v4 = vrot.slane %v432_v20, %v2717_v40 }
 0x10c   : > { %1272 = vrot.lane.b32.xlu1 %v1232_v46, %s2567_s29  ;;  %v3461_v46 = vpop.permute.xlu0 %606 }
 0x10d   : > { %4341 = vst [vmem:[#allocation33_spill] sm:$0xff] %v3534_v4 }
 0x10e   : > { %1010 = vrot.lane.b32.xlu0 %v3442_v0, %s2566_s28  ;;  %v3473_v13 = vpop.permute.xlu1 %618 }
 0x10f   : > { %4338 = vst [vmem:[#allocation31_spill] sm:$0xff] %v3473_v13  ;;  %v646_v47 = vcombine.low %v3452_v26, %v3473_v13 }
 0x110   : > { %1510 = vrot.lane.b32.xlu1 %v1463_v32, %s2570_s4  ;;  %v4339_v32 = vcombine.low %v2999_v42, %v2993_v31 }
 0x112   : > { %1240 = vrot.lane.b32.xlu0 %v3459_v12, %s2566_s28  ;;  %v3484_v59 = vrot.slane %v4339_v32, %v2717_v40  ;;  %v731_v32 = vcombine.high %v3368_v44, %v3371_v54  ;;  %v3530_v26 = vpop.permute.xlu1 %1729  ;;  %v464_v54 = vcombine.high %v3534_v4, %v4319_v29  ;;  %v4342_v44 = vcombine.low %v3036_v56, %v3030_v48 }
 0x113   : > { %4340 = vst [vmem:[#allocation32_spill] sm:$0xff] %v3530_v26 }
 0x114   : > { %1745 = vrot.lane.b32.xlu1 %v1698_v11, %s2570_s4  ;;  %v3488_v11 = vpop.permute.xlu0 %614  ;;  %v745_v25 = vrot.slane %v731_v32, %v2717_v40  ;;  %v223_v32 = vcombine.low %v4345_v14, %v2669_v19 }
 0x115   : > { %v630_v6 = vcombine.low %v3461_v46, %v3488_v11 }
 0x116   : > { %1478 = vrot.lane.b32.xlu0 %v3471_v17, %s2565_s27  ;;  %v3556_v20 = vpop.permute.xlu1 %1733  ;;  %v3578_v19 = vrot.slane %v223_v32, %v2677_v23 }
 0x117   : > { %v3509_v41 = vrot.slane %v630_v6, %v2677_v23  ;;  %v515_v6 = vrot.slane %v501_v10, %v2717_v40  ;;  %v1215_v10 = vcombine.low %v3540_v60, %v3537_v52  ;;  %4344 = vst [vmem:[#allocation35_spill] sm:$0xff] %v3556_v20  ;;  %v934_v20 = vcombine.high %v3442_v0, %v4319_v29 }
 0x118   : > { %1983 = vrot.lane.b32.xlu1 %v1929_v3, %s2572_s6  ;;  %v3514_v3 = vrot.slane %v646_v47, %v2677_v23  ;;  %v2090_v47 = vcombine.high %v2080_v58, %v4319_v29  ;;  %v993_v58 = vrot.slane %v4342_v44, %v2717_v40  ;;  %v4347_v44 = vld [vmem:[#allocation5_spill] sm:$0xff]  ;;  %v3568_v26 = vpop.permute.xlu0 %1701  ;;  %v1164_v0 = vcombine.high %v3459_v12, %v4319_v29 }
 0x11a   : > { %1713 = vrot.lane.b32.xlu0 %v3484_v59, %s2565_s27  ;;  %v662_v27 = vcombine.low %v3509_v41, %v3514_v3 }
 0x11c   : > { %2209 = vrot.lane.b32.xlu1 %v3506_v55, %s2571_s5  ;;  %v3552_v43 = vrot.slane %v662_v27, %v2717_v40  ;;  %v1446_v27 = vcombine.high %v3324_v22, %v3321_v24  ;;  %v3585_v22 = vpop.permute.xlu0 %1963 }
 0x11e   : > { %1951 = vrot.lane.b32.xlu0 %v1857_v63, %s2571_s5  ;;  %4343 = vst [vmem:[#allocation34_spill] sm:$0xff] %v3552_v43  ;;  %v694_v2 = vcombine.high %v3552_v43, %v4319_v29  ;;  %v1460_v24 = vrot.slane %v1446_v27, %v2717_v40 }
 0x120   : > { %569 = vrot.lane.b32.xlu1 %v515_v6, %s2566_s28 }
 0x122   : > { %2177 = vrot.lane.b32.xlu0 %v2090_v47, %s2570_s4  ;;  %v4346_v47 = vld [vmem:[#allocation7_spill] sm:$0xff] }
 0x123   : > { %v239_v4 = vcombine.low %v4347_v44, %v4346_v47  ;;  %v3601_v47 = vpop.permute.xlu0 %1935  ;;  %v1395_v44 = vcombine.high %v3471_v17, %v4319_v29 }
 0x124   : > { %799 = vrot.lane.b32.xlu1 %v745_v25, %s2566_s28 }
 0x125   : > { %v3581_v14 = vrot.slane %v239_v4, %v2677_v23 }
 0x126   : > { %537 = vrot.lane.b32.xlu0 %v464_v54, %s2568_s30  ;;  %v1223_v54 = vrot.slane %v1215_v10, %v2717_v40 }
 0x127   : > { %v255_v4 = vcombine.low %v3578_v19, %v3581_v14 }
 0x128   : > { %1046 = vrot.lane.b32.xlu1 %v993_v58, %s2565_s27  ;;  %v3574_v13 = vpop.permute.xlu1 %2193 }
 0x12a   : > { %767 = vrot.lane.b32.xlu0 %v694_v2, %s2568_s30  ;;  %v4348_v2 = vcombine.high %v2944_v16, %v2950_v18  ;;  %v3609_v16 = vrot.slane %v255_v4, %v2717_v40  ;;  %v533_v4 = vcombine.high %v515_v6, %v4319_v29  ;;  %v1116_v6 = vcombine.high %v3210_v53, %v3234_v5 }
 0x12c   : > { %1276 = vrot.lane.b32.xlu1 %v1223_v54, %s2565_s27  ;;  %v1695_v32 = vrot.slane %v4348_v2, %v2717_v40  ;;  %4349 = vst [vmem:[#allocation6_spill] sm:$0xff] %v3609_v16  ;;  %v287_v17 = vcombine.high %v3609_v16, %v4319_v29 }
 0x12e   : > { %1014 = vrot.lane.b32.xlu0 %v934_v20, %s2567_s29  ;;  %v2073_v20 = vcombine.high %v3397_v9, %v3394_v30  ;;  %v1630_v30 = vcombine.high %v3484_v59, %v4319_v29  ;;  %v1861_v59 = vcombine.high %v1857_v63, %v4319_v29  ;;  %v763_v63 = vcombine.high %v745_v25, %v4319_v29 }
 0x12f   : > { %v3660_v25 = vrot.slane %v1116_v6, %v2677_v23  ;;  %v485_v6 = vcombine.high %v3252_v50, %v3278_v61  ;;  %v699_v61 = vcombine.high %v3304_v35, %v3340_v57 }
 0x130   : > { %v3589_v10 = vpop.permute.xlu1 %1498  ;;  %1514 = vrot.lane.b32.xlu1 %v1460_v24, %s2571_s5  ;;  %v3613_v18 = vrot.slane %v2073_v20, %v2717_v40  ;;  %v433_v20 = vcombine.high %v3491_v39, %v3496_v34  ;;  %v1100_v39 = vcombine.high %v3212_v8, %v3223_v1  ;;  %v663_v34 = vcombine.high %v3509_v41, %v3514_v3 }
 0x131   : > { %v1233_v41 = vcombine.high %v1223_v54, %v4319_v29  ;;  %v4350_v3 = vcombine.low %v3150_v15, %v3144_v33  ;;  %v1464_v54 = vcombine.high %v1460_v24, %v4319_v29  ;;  %v715_v24 = vcombine.high %v3306_v37, %v3342_v7 }
 0x132   : > { %1244 = vrot.lane.b32.xlu0 %v1164_v0, %s2567_s29  ;;  %v3663_v53 = vrot.slane %v1100_v39, %v2677_v23  ;;  %v677_v1 = vrot.slane %v663_v34, %v2717_v40  ;;  %v3728_v57 = vrot.slane %v699_v61, %v2677_v23 }
 0x133   : > { %v3731_v7 = vrot.slane %v715_v24, %v2677_v23 }
 0x134   : > { %v3603_v12 = vpop.permute.xlu1 %1971  ;;  %1749 = vrot.lane.b32.xlu1 %v1695_v32, %s2571_s5 }
 0x136   : > { %1482 = vrot.lane.b32.xlu0 %v1395_v44, %s2570_s4 }
 0x138   : > { %v3617_v9 = vpop.permute.xlu1 %1931  ;;  %2181 = vrot.lane.b32.xlu1 %v3613_v18, %s2571_s5  ;;  %v3621_v27 = vpop.permute.xlu0 %2165 }
 0x13a   : > { %1717 = vrot.lane.b32.xlu0 %v1630_v30, %s2570_s4 }
 0x13c   : > { %v3626_v0 = vpop.permute.xlu1 %2189  ;;  %320 = vrot.lane.b32.xlu1 %v287_v17, %s2568_s30  ;;  %v3629_v2 = vpop.permute.xlu0 %1959  ;;  %v2159_v17 = vcombine.high %v3506_v55, %v4319_v29  ;;  %v447_v55 = vrot.slane %v433_v20, %v2717_v40  ;;  %v1147_v20 = vcombine.low %v3663_v53, %v3660_v25 }
 0x13e   : > { %1955 = vrot.lane.b32.xlu0 %v1861_v59, %s2572_s6  ;;  %v1003_v59 = vcombine.high %v993_v58, %v4319_v29  ;;  %v925_v58 = vrot.slane %v4350_v3, %v2717_v40  ;;  %v1699_v3 = vcombine.high %v1695_v32, %v4319_v29 }
 0x140   : > { %v3636_v44 = vpop.permute.xlu1 %1967  ;;  %573 = vrot.lane.b32.xlu1 %v533_v4, %s2567_s29  ;;  %v3639_v30 = vpop.permute.xlu0 %1494 }
 0x142   : > { %2213 = vrot.lane.b32.xlu0 %v2159_v17, %s2572_s6 }
 0x144   : > { %803 = vrot.lane.b32.xlu1 %v763_v63, %s2567_s29  ;;  %v3653_v4 = vpop.permute.xlu0 %2161  ;;  %v3656_v17 = vpop.permute.xlu1 %2197 }
 0x146   : > { %541 = vrot.lane.b32.xlu0 %v447_v55, %s2566_s28 }
 0x148   : > { %1050 = vrot.lane.b32.xlu1 %v1003_v59, %s2570_s4  ;;  %v3666_v8 = vpop.permute.xlu0 %1466  ;;  %v469_v59 = vcombine.high %v3250_v36, %v3276_v38  ;;  %v256_v36 = vcombine.high %v3578_v19, %v3581_v14  ;;  %v3703_v38 = vrot.slane %v485_v6, %v2677_v23  ;;  %v4351_v14 = vcombine.high %v3168_v49, %v3156_v45 }
 0x149   : > { %v4352_v45 = vcombine.high %v2999_v42, %v2993_v31  ;;  %v746_v6 = vcombine.low %v3728_v57, %v3731_v7  ;;  %v2091_v42 = vcombine.high %v3613_v18, %v4319_v29  ;;  %v1216_v18 = vcombine.high %v3540_v60, %v3537_v52  ;;  %v4354_v52 = vld [vmem:[#allocation31_spill] sm:$0xff]  ;;  %v4355_v60 = vld [vmem:[#allocation30_spill] sm:$0xff] }
 0x14a   : > { %v3669_v5 = vpop.permute.xlu1 %1264  ;;  %771 = vrot.lane.b32.xlu0 %v677_v1, %s2566_s28  ;;  %v3700_v50 = vrot.slane %v469_v59, %v2677_v23  ;;  %v3720_v32 = vrot.slane %v4351_v14, %v2717_v40  ;;  %v3723_v35 = vrot.slane %v256_v36, %v2717_v40 }
 0x14b   : > { %v1627_v49 = vrot.slane %v4352_v45, %v2717_v40  ;;  %v3761_v24 = vrot.slane %v746_v6, %v2717_v40  ;;  %v4353_v45 = vcombine.high %v3036_v56, %v3030_v48  ;;  %v417_v6 = vcombine.high %v3420_v51, %v3434_v28 }
 0x14c   : > { %1280 = vrot.lane.b32.xlu1 %v1233_v41, %s2570_s4  ;;  %v3680_v63 = vpop.permute.xlu0 %1939  ;;  %v3694_v41 = vrot.slane %v1147_v20, %v2717_v40  ;;  %v516_v37 = vcombine.low %v3700_v50, %v3703_v38  ;;  %v695_v48 = vcombine.high %v677_v1, %v4319_v29  ;;  %v3792_v51 = vrot.slane %v1216_v18, %v2717_v40  ;;  %v4356_v1 = vld [vmem:[#allocation20_spill] sm:$0xff] }
 0x14d   : > { %v3772_v16 = vrot.slane %v4353_v45, %v2717_v40  ;;  %v3789_v56 = vrot.slane %v417_v6, %v2677_v23  ;;  %v1993_v45 = vsel %vm347_vm2, %v4356_v1, %v3629_v2  ;;  %v1631_v18 = vcombine.high %v1627_v49, %v4319_v29 }
 0x14e   : > { %v3686_v39 = vpop.permute.xlu1 %1502  ;;  %1018 = vrot.lane.b32.xlu0 %v925_v58, %s2565_s27  ;;  %v3749_v36 = vrot.slane %v516_v37, %v2717_v40  ;;  %v465_v37 = vcombine.high %v447_v55, %v4319_v29 }
 0x150   : > { %1518 = vrot.lane.b32.xlu1 %v1464_v54, %s2572_s6  ;;  %v3691_v34 = vpop.permute.xlu0 %1034 }
 0x152   : > { %v3709_v54 = vpop.permute.xlu1 %1737  ;;  %1248 = vrot.lane.b32.xlu0 %v3694_v41, %s2565_s27 }
 0x154   : > { %1753 = vrot.lane.b32.xlu1 %v1699_v3, %s2572_s6  ;;  %v3714_v19 = vpop.permute.xlu0 %1470 }
 0x156   : > { %v1976_v20 = vpop.permute.xlu1 %1975  ;;  %1486 = vrot.lane.b32.xlu0 %v3720_v32, %s2571_s5 }
 0x158   : > { %324 = vrot.lane.b32.xlu1 %v3723_v35, %s2566_s28  ;;  %v3741_v59 = vpop.permute.xlu0 %1705  ;;  %s2503_s28 = sshll.u32 %s2573_s13, 4  ;;  %s2504_s28 = int_to_ptr.vmem [resolvable:$false] %s2503_s28 }
 0x159   : > { %p2506_p0 = scmp.lt.s32.totalorder %s4232_s21, %s2504_s28 }
 0x15a   : > { %v3745_v3 = vpop.permute.xlu1 %2201  ;;  %1721 = vrot.lane.b32.xlu0 %v1627_v49, %s2571_s5  ;;  %v1165_v49 = vcombine.high %v3694_v41, %v4319_v29  ;;  %v4358_v41 = vld [vmem:[#allocation18_spill] sm:$0xff] }
 0x15c   : > { %577 = vrot.lane.b32.xlu1 %v3749_v36, %s2565_s27  ;;  %v3753_v31 = vpop.permute.xlu0 %1943 }
 0x15e   : > { %v3757_v61 = vpop.permute.xlu1 %1038  ;;  %2185 = vrot.lane.b32.xlu0 %v2091_v42, %s2572_s6  ;;  %v401_v42 = vcombine.high %v3428_v62, %v3444_v21  ;;  %v935_v62 = vcombine.high %v925_v58, %v4319_v29  ;;  %v631_v21 = vcombine.high %v3461_v46, %v3488_v11  ;;  %v1994_v46 = vsel %vm349_vm3, %v1993_v45, %v3585_v22 }
 0x160   : > { %807 = vrot.lane.b32.xlu1 %v3761_v24, %s2565_s27  ;;  %v3765_v14 = vpop.permute.xlu0 %2169  ;;  %v3796_v28 = vrot.slane %v401_v42, %v2677_v23  ;;  %v3816_v11 = vrot.slane %v631_v21, %v2677_v23  ;;  %v4357_v21 = vld [vmem:[#allocation19_spill] sm:$0xff] }
 0x162   : > { %v3780_v43 = vpop.permute.xlu1 %1268  ;;  %545 = vrot.lane.b32.xlu0 %v465_v37, %s2567_s29  ;;  %v647_v37 = vcombine.high %v4355_v60, %v4354_v52  ;;  %v448_v2 = vcombine.low %v3796_v28, %v3789_v56 }
 0x164   : > { %1054 = vrot.lane.b32.xlu1 %v3772_v16, %s2571_s5  ;;  %v3785_v55 = vpop.permute.xlu0 %1006  ;;  %v3821_v42 = vrot.slane %v647_v37, %v2677_v23  ;;  %v3843_v45 = vrot.slane %v448_v2, %v2717_v40  ;;  %v2495_v2 = vld [vmem:[%s2643_s25 + $0x8] sm:$0xff] }
 0x166   : > { %v3805_v6 = vpop.permute.xlu1 %1506  ;;  %775 = vrot.lane.b32.xlu0 %v695_v48, %s2567_s29  ;;  %v1995_v48 = vsel %vm351_vm4, %v1994_v46, %v3636_v44  ;;  %v2223_v44 = vsel %vm347_vm2, %v4357_v21, %v3626_v0  ;;  %v678_v60 = vcombine.low %v3816_v11, %v3821_v42  ;;  %v1986_v0 = vsel %vm347_vm2, %v4358_v41, %v3617_v9  ;;  %v2497_v21 = vld [vmem:[%s2643_s25 + $0x20] sm:$0xff] }
 0x167   : > { %v1396_v46 = vcombine.high %v3720_v32, %v4319_v29  ;;  %v288_v41 = vcombine.high %v3723_v35, %v4319_v29 }
 0x168   : > { %1284 = vrot.lane.b32.xlu1 %v3792_v51, %s2571_s5  ;;  %v3810_v58 = vpop.permute.xlu0 %1236  ;;  %v3871_v32 = vrot.slane %v678_v60, %v2717_v40 }
 0x16a   : > { %v3825_v52 = vpop.permute.xlu1 %1741  ;;  %1022 = vrot.lane.b32.xlu0 %v935_v62, %s2570_s4  ;;  %v1996_v62 = vsel %vm353_vm6, %v1995_v48, %v3603_v12  ;;  %v2224_v12 = vsel %vm349_vm3, %v2223_v44, %v3574_v13  ;;  %v2496_v48 = vld [vmem:[%s2643_s25 + $0x38] sm:$0xff]  ;;  %v1987_v13 = vsel %vm349_vm3, %v1986_v0, %v3601_v47  ;;  %v4359_v47 = vcombine.high %v3150_v15, %v3144_v33  ;;  %v4360_v0 = vld [vmem:[#allocation22_spill] sm:$0xff] }
 0x16b   : > { %v1997_v37 = vsel %vm355_vm5, %v1996_v62, %v1976_v20  ;;  %v2498_v62 = vld [vmem:[%s2643_s25 + $0x50] sm:$0xff]  ;;  %v2216_v60 = vsel %vm347_vm2, %v4360_v0, %v3653_v4  ;;  %v1148_v33 = vcombine.high %v3663_v53, %v3660_v25  ;;  %v4361_v53 = vld [vmem:[#allocation25_spill] sm:$0xff]  ;;  %s2359_s25 = scalar_lea.hbm %s4272_s2, %s2434_s22 }
 0x16c   : > { %1725 = vrot.lane.b32.xlu1 %v1631_v18, %s2572_s6  ;;  %v3829_v22 = vpop.permute.xlu0 %1474  ;;  %v240_v9 = vcombine.high %v2497_v21, %v2498_v62  ;;  %v1068_v21 = vsel %vm347_vm2, %v4361_v53, %v3691_v34  ;;  %v764_v34 = vcombine.high %v3761_v24, %v4319_v29  ;;  %v1004_v24 = vcombine.high %v3772_v16, %v4319_v29 }
 0x16e   : > { %v1980_v1 = vpop.permute.xlu1 %1979  ;;  %1252 = vrot.lane.b32.xlu0 %v1165_v49, %s2570_s4  ;;  %v224_v49 = vcombine.high %v2495_v2, %v2496_v48  ;;  %v1988_v2 = vsel %vm351_vm4, %v1987_v13, %v3680_v63 }
 0x16f   : > { %v3849_v18 = vsel %vm357_vm7, %v1997_v37, %v1980_v1  ;;  %v2225_v37 = vsel %vm351_vm4, %v2224_v12, %v3656_v17  ;;  %v1989_v12 = vsel %vm353_vm6, %v1988_v2, %v3753_v31  ;;  %v2217_v31 = vsel %vm349_vm3, %v2216_v60, %v3621_v27 }
 0x170   : > { %549 = vrot.lane.b32.xlu1 %v3843_v45, %s2565_s27  ;;  %v3855_v20 = vpop.permute.xlu0 %1709  ;;  %v2226_v44 = vsel %vm353_vm6, %v2225_v37, %v3745_v3  ;;  %v3884_v3 = vrot.slane %v4359_v47, %v2717_v40  ;;  %v3894_v35 = vrot.slane %v224_v49, %v2677_v23  ;;  %v2218_v48 = vsel %vm351_vm4, %v2217_v31, %v3765_v14 }
 0x171   : > { %v534_v49 = vcombine.high %v3749_v36, %v4319_v29  ;;  %v1069_v27 = vsel %vm349_vm3, %v1068_v21, %v3757_v61  ;;  %v4362_v61 = vld [vmem:[#allocation21_spill] sm:$0xff]  ;;  %v517_v2 = vcombine.high %v3700_v50, %v3703_v38  ;;  %v4365_v50 = vld [vmem:[#allocation32_spill] sm:$0xff] }
 0x172   : > { %v2206_v1 = vpop.permute.xlu1 %2205  ;;  %1490 = vrot.lane.b32.xlu0 %v1396_v46, %s2572_s6  ;;  %v3897_v46 = vrot.slane %v240_v9, %v2677_v23  ;;  %v1162_v9 = vrot.slane %v1148_v33, %v2717_v40  ;;  %v4366_v38 = vld [vmem:[#allocation12_spill] sm:$0xff] }
 0x173   : > { %v3878_v17 = vsel %vm355_vm5, %v2226_v44, %v2206_v1  ;;  %v1528_v44 = vsel %vm347_vm2, %v4362_v61, %v3639_v30  ;;  %v4363_v1 = vld [vmem:[#allocation24_spill] sm:$0xff] }
 0x174   : > { %779 = vrot.lane.b32.xlu1 %v3871_v32, %s2565_s27  ;;  %v1948_v63 = vpop.permute.xlu0 %1947  ;;  %v271_v25 = vcombine.low %v3894_v35, %v3897_v46  ;;  %v1529_v30 = vsel %vm349_vm3, %v1528_v44, %v3589_v10  ;;  %v747_v10 = vcombine.high %v3728_v57, %v3731_v7  ;;  %v1234_v7 = vcombine.high %v3792_v51, %v4319_v29 }
 0x175   : > { %v3900_v15 = vsel %vm355_vm5, %v1989_v12, %v1948_v63  ;;  %v1763_v63 = vsel %vm347_vm2, %v4366_v38, %v4365_v50  ;;  %v1530_v16 = vsel %vm351_vm4, %v1529_v30, %v3686_v39  ;;  %v4372_v50 = vld [vmem:[#allocation10_spill] sm:$0xff] }
 0x176   : > { %v3904_v4 = vpop.permute.xlu1 %795  ;;  %328 = vrot.lane.b32.xlu0 %v288_v41, %s2567_s29  ;;  %v3936_v13 = vrot.slane %v271_v25, %v2717_v40  ;;  %v1298_v41 = vsel %vm347_vm2, %v4363_v1, %v3669_v5  ;;  %v4364_v5 = vld [vmem:[#allocation26_spill] sm:$0xff]  ;;  %v4368_v25 = vld [vmem:[#allocation27_spill] sm:$0xff]  ;;  %v761_v61 = vrot.slane %v747_v10, %v2717_v40  ;;  %v221_v38 = vcombine.high %v4372_v50, %v4319_v29  ;;  %s2505_s29 = scalar_lea.vmem %s2504_s28, 512 }
 0x177   : > { %v1299_v47 = vsel %vm349_vm3, %v1298_v41, %v3780_v43  ;;  %v1061_v12 = vsel %vm347_vm2, %v4364_v5, %v3785_v55  ;;  %v1531_v55 = vsel %vm353_vm6, %v1530_v16, %v3805_v6  ;;  %v1291_v53 = vsel %vm347_vm2, %v4368_v25, %v3810_v58  ;;  %v4370_v41 = vld [vmem:[#allocation13_spill] sm:$0xff] }
 0x178   : > { %1026 = vrot.lane.b32.xlu1 %v3884_v3, %s2571_s5  ;;  %v2174_v23 = vpop.permute.xlu0 %2173  ;;  %v4371_v5 = vld [vmem:[#allocation29_spill] sm:$0xff] }
 0x179   : > { %v3921_v62 = vsel %vm353_vm6, %v2218_v48, %v2174_v23  ;;  %v531_v48 = vrot.slane %v517_v2, %v2717_v40  ;;  %v449_v2 = vcombine.high %v3796_v28, %v3789_v56  ;;  %v696_v56 = vcombine.high %v3871_v32, %v4319_v29 }
 0x17a   : > { %v1043_v14 = vpop.permute.xlu1 %1042  ;;  %581 = vrot.lane.b32.xlu0 %v534_v49, %s2570_s4  ;;  %v4367_v49 = vld [vmem:[#allocation35_spill] sm:$0xff] }
 0x17b   : > { %v3928_v36 = vsel %vm351_vm4, %v1069_v27, %v1043_v14  ;;  %v1764_v39 = vsel %vm349_vm3, %v1763_v63, %v4367_v49  ;;  %v4369_v27 = vld [vmem:[#allocation23_spill] sm:$0xff]  ;;  %v4373_v63 = vld [vmem:[#allocation28_spill] sm:$0xff] }
 0x17c   : > { %1256 = vrot.lane.b32.xlu1 %v1162_v9, %s2571_s5  ;;  %v3931_v37 = vpop.permute.xlu0 %565  ;;  %v1765_v6 = vsel %vm351_vm4, %v1764_v39, %v3709_v54  ;;  %v1521_v14 = vsel %vm347_vm2, %v4369_v27, %v3666_v8  ;;  %v4375_v49 = vld [vmem:[#allocation8_spill] sm:$0xff] }
 0x17d   : > { %v1522_v51 = vsel %vm349_vm3, %v1521_v14, %v3714_v19  ;;  %v1756_v19 = vsel %vm347_vm2, %v4370_v41, %v3568_v26 }
 0x17e   : > { %v1273_v0 = vpop.permute.xlu1 %1272  ;;  %811 = vrot.lane.b32.xlu0 %v764_v34, %s2570_s4  ;;  %v1766_v34 = vsel %vm353_vm6, %v1765_v6, %v3825_v52  ;;  %v1523_v44 = vsel %vm351_vm4, %v1522_v51, %v3829_v22  ;;  %v466_v52 = vcombine.high %v3843_v45, %v4319_v29  ;;  %v1166_v22 = vcombine.high %v1162_v9, %v4319_v29 }
 0x17f   : > { %v3952_v60 = vsel %vm351_vm4, %v1299_v47, %v1273_v0  ;;  %v1757_v0 = vsel %vm349_vm3, %v1756_v19, %v3741_v59  ;;  %v679_v9 = vcombine.high %v3816_v11, %v3821_v42  ;;  %v765_v6 = vcombine.high %v761_v61, %v4319_v29 }
 0x180   : > { %332 = vrot.lane.b32.xlu1 %v3936_v13, %s2565_s27  ;;  %v1011_v43 = vpop.permute.xlu0 %1010  ;;  %s2499_s27 = scalar_lea.vmem %s4232_s21, 256 }
 0x181   : > { %v3967_v33 = vsel %vm349_vm3, %v1061_v12, %v1011_v43  ;;  %v599_v12 = vsel %vm347_vm2, %v4371_v5, %v3931_v37  ;;  %v693_v42 = vrot.slane %v679_v9, %v2717_v40  ;;  %v289_v43 = vcombine.high %v3936_v13, %v4319_v29  ;;  %p2500_p11 = scmp.ne.s32.totalorder %s4232_s21, %s2499_s27  ;;  %p2507_p1 = scmp.lt.s32.totalorder %s2505_s29, %s2499_s27 }
 0x182   : > { %v1511_v31 = vpop.permute.xlu1 %1510  ;;  %1058 = vrot.lane.b32.xlu0 %v1004_v24, %s2572_s6  ;;  %v1758_v24 = vsel %vm351_vm4, %v1757_v0, %v3855_v20  ;;  %v936_v20 = vcombine.high %v3884_v3, %v4319_v29  ;;  %v829_v37 = vsel %vm347_vm2, %v4373_v63, %v3904_v4  ;;  %v272_v4 = vcombine.high %v3894_v35, %v3897_v46 }
 0x183   : > { %v3976_v23 = vsel %vm355_vm5, %v1531_v55, %v1511_v31  ;;  %v535_v55 = vcombine.high %v531_v48, %v4319_v29  ;;  %v4374_v31 = vld [vmem:[#allocation9_spill] sm:$0xff]  ;;  %p2501_p12 = pnand %p2500_p11, %p2627_p5  ;;  %p2508_p2 = por %p2507_p1, %p2506_p0 }
 0x184   : > { %585 = vrot.lane.b32.xlu1 %v531_v48, %s2571_s5  ;;  %v1241_v57 = vpop.permute.xlu0 %1240  ;;  %v204_v39 = vcombine.high %v4375_v49, %v4374_v31  ;;  %v286_v14 = vrot.slane %v272_v4, %v2717_v40 }
 0x185   : > { %v3989_v21 = vsel %vm349_vm3, %v1291_v53, %v1241_v57  ;;  %p2502_p13 = pneg %p2501_p12 }
 0x186   : > { %v1746_v58 = vpop.permute.xlu1 %1745  ;;  %1288 = vrot.lane.b32.xlu0 %v1234_v7, %s2572_s6  ;;  %v218_v48 = vrot.slane %v204_v39, %v2717_v40 }
 0x187   : > { %v4001_v54 = vsel %vm355_vm5, %v1766_v34, %v1746_v58  ;;  %p2509_p3 = pnand %p2508_p2, %p2502_p13 }
 0x188   : > { %815 = vrot.lane.b32.xlu1 %v761_v61, %s2571_s5  ;;  %v1479_v8 = vpop.permute.xlu0 %1478  ;;  %v222_v46 = vcombine.high %v218_v48, %v4319_v29 }
 0x189   : > { %v4009_v1 = vsel %vm353_vm6, %v1523_v44, %v1479_v8 }
 0x18a   : > { %v1984_v47 = vpop.permute.xlu1 %1983  ;;  %553 = vrot.lane.b32.xlu0 %v466_v52, %s2570_s4 }
 0x18b   : > { %v4022_v45 = vsel %vm359_vm8, %v3849_v18, %v1984_v47  ;;  %v463_v18 = vrot.slane %v449_v2, %v2717_v40 }
 0x18c   : > { %1260 = vrot.lane.b32.xlu1 %v1166_v22, %s2572_s6  ;;  %v1714_v26 = vpop.permute.xlu0 %1713 }
 0x18d   : > { %v4030_v28 = vsel %vm353_vm6, %v1758_v24, %v1714_v26  ;;  %v467_v53 = vcombine.high %v463_v18, %v4319_v29  ;;  %v4376_v26 = vld [vmem:[#allocation33_spill] sm:$0xff] }
 0x18e   : > { %v2210_v59 = vpop.permute.xlu1 %2209  ;;  %783 = vrot.lane.b32.xlu0 %v696_v56, %s2570_s4 }
 0x18f   : > { %v2228_v22 = vsel %vm357_vm7, %v3878_v17, %v2210_v59  ;;  %v4377_v17 = vld [vmem:[#allocation34_spill] sm:$0xff] }
 0x190   : > { %557 = vrot.lane.b32.xlu1 %v463_v18, %s2571_s5  ;;  %v1952_v30 = vpop.permute.xlu0 %1951 }
 0x191   : > { %v4041_v32 = vsel %vm357_vm7, %v3900_v15, %v1952_v30 }
 0x192   : > { %v570_v11 = vpop.permute.xlu1 %569  ;;  %1030 = vrot.lane.b32.xlu0 %v936_v20, %s2572_s6 }
 0x193   : > { %v600_v3 = vsel %vm349_vm3, %v599_v12, %v570_v11 }
 0x194   : > { %787 = vrot.lane.b32.xlu1 %v693_v42, %s2571_s5  ;;  %v4054_v15 = vpop.permute.xlu0 %2177 }
 0x196   : > { %v800_v16 = vpop.permute.xlu1 %799  ;;  %336 = vrot.lane.b32.xlu0 %v289_v43, %s2570_s4 }
 0x197   : > { %v830_v10 = vsel %vm349_vm3, %v829_v37, %v800_v16 }
 0x198   : > { %308 = vrot.lane.b32.xlu1 %v221_v38, %s2570_s4  ;;  %v538_v13 = vpop.permute.xlu0 %537  ;;  %v2251_v38 = vrot.slane %v4022_v45, 4  ;;  %v2220_v45 = vsel %vm355_vm5, %v3921_v62, %v4054_v15 }
 0x199   : > { %v592_v56 = vsel %vm347_vm2, %v4376_v26, %v538_v13 }
 0x19a   : > { %v1047_v25 = vpop.permute.xlu1 %1046  ;;  %589 = vrot.lane.b32.xlu0 %v535_v55, %s2572_s6  ;;  %v4378_v55 = vld [vmem:[#allocation6_spill] sm:$0xff] }
 0x19b   : > { %v1071_v57 = vsel %vm353_vm6, %v3928_v36, %v1047_v25 }
 0x19c   : > { %561 = vrot.lane.b32.xlu1 %v467_v53, %s2572_s6  ;;  %v768_v7 = vpop.permute.xlu0 %767 }
 0x19d   : > { %v822_v59 = vsel %vm347_vm2, %v4377_v17, %v768_v7 }
 0x19e   : > { %v1277_v27 = vpop.permute.xlu1 %1276  ;;  %819 = vrot.lane.b32.xlu0 %v765_v6, %s2572_s6 }
 0x19f   : > { %v4078_v34 = vsel %vm353_vm6, %v3952_v60, %v1277_v27  ;;  %v697_v60 = vcombine.high %v693_v42, %v4319_v29 }
 0x1a0   : > { %312 = vrot.lane.b32.xlu1 %v218_v48, %s2571_s5  ;;  %v1015_v35 = vpop.permute.xlu0 %1014 }
 0x1a1   : > { %v1063_v36 = vsel %vm351_vm4, %v3967_v33, %v1015_v35  ;;  %v290_v33 = vcombine.high %v286_v14, %v4319_v29 }
 0x1a2   : > { %v1515_v58 = vpop.permute.xlu1 %1514  ;;  %340 = vrot.lane.b32.xlu0 %v286_v14, %s2571_s5 }
 0x1a3   : > { %v4087_v61 = vsel %vm357_vm7, %v3976_v23, %v1515_v58 }
 0x1a4   : > { %316 = vrot.lane.b32.xlu1 %v222_v46, %s2572_s6  ;;  %v1245_v40 = vpop.permute.xlu0 %1244 }
 0x1a5   : > { %v4093_v51 = vsel %vm351_vm4, %v3989_v21, %v1245_v40 }
 0x1a6   : > { %v1750_v44 = vpop.permute.xlu1 %1749  ;;  %791 = vrot.lane.b32.xlu0 %v697_v60, %s2572_s6 }
 0x1a7   : > { %v1768_v63 = vsel %vm357_vm7, %v4001_v54, %v1750_v44 }
 0x1a8   : > { %v1483_v8 = vpop.permute.xlu0 %1482 }
 0x1a9   : > { %v4099_v52 = vsel %vm355_vm5, %v4009_v1, %v1483_v8 }
 0x1aa   : > { %v2182_v23 = vpop.permute.xlu1 %2181  ;;  %344 = vrot.lane.b32.xlu0 %v290_v33, %s2572_s6 }
 0x1ab   : > { %v2221_v4 = vsel %vm357_vm7, %v2220_v45, %v2182_v23  ;;  %v4380_v45 = vld [vmem:[#allocation11_spill] sm:$0xff] }
 0x1ac   : > { %v1718_v41 = vpop.permute.xlu0 %1717 }
 0x1ae   : > { %v321_v19 = vpop.permute.xlu1 %320 }
 0x1af   : > { %v361_v31 = vsel %vm347_vm2, %v4378_v55, %v321_v19 }
 0x1b0   : > { %v1956_v2 = vpop.permute.xlu0 %1955 }
 0x1b1   : > { %v1992_v15 = vsel %vm359_vm8, %v4041_v32, %v1956_v2 }
 0x1b2   : > { %v574_v47 = vpop.permute.xlu1 %573  ;;  %v2250_v58 = vrot.slane %v1992_v15, 4 }
 0x1b3   : > { %v601_v21 = vsel %vm351_vm4, %v600_v3, %v574_v47 }
 0x1b4   : > { %v2214_v0 = vpop.permute.xlu0 %2213 }
 0x1b5   : > { %v2229_v29 = vsel %vm359_vm8, %v2228_v22, %v2214_v0 }
 0x1b6   : > { %v804_v24 = vpop.permute.xlu1 %803  ;;  %2426 = vmatprep.subr.msk.mxu0 %vm2254_vm9, %v2229_v29 }
 0x1b7   : > { %v4108_v1 = vsel %vm351_vm4, %v830_v10, %v804_v24 }
 0x1b8   : > { %v542_v9 = vpop.permute.xlu0 %541 }
 0x1b9   : > { %v593_v18 = vsel %vm349_vm3, %v592_v56, %v542_v9 }
 0x1ba   : > { %v1051_v20 = vpop.permute.xlu1 %1050 }
 0x1bb   : > { %v4114_v30 = vsel %vm355_vm5, %v1071_v57, %v1051_v20 }
 0x1bc   : > { %v772_v5 = vpop.permute.xlu0 %771 }
 0x1bd   : > { %v4119_v12 = vsel %vm349_vm3, %v822_v59, %v772_v5 }
 0x1be   : > { %v1281_v11 = vpop.permute.xlu1 %1280 }
 0x1bf   : > { %v1302_v26 = vsel %vm355_vm5, %v4078_v34, %v1281_v11 }
 0x1c0   : > { %v1019_v42 = vpop.permute.xlu0 %1018 }
 0x1c1   : > { %v4122_v43 = vsel %vm353_vm6, %v1063_v36, %v1019_v42  ;;  %v1760_v36 = vsel %vm355_vm5, %v4030_v28, %v1718_v41 }
 0x1c2   : > { %v1519_v3 = vpop.permute.xlu1 %1518 }
 0x1c3   : > { %v1534_v29 = vsel %vm359_vm8, %v4087_v61, %v1519_v3 }
 0x1c4   : > { %v1249_v50 = vpop.permute.xlu0 %1248  ;;  %v2245_v56 = vrot.slane %v1534_v29, 4 }
 0x1c5   : > { %v1294_v61 = vsel %vm353_vm6, %v4093_v51, %v1249_v50 }
 0x1c6   : > { %v1754_v37 = vpop.permute.xlu1 %1753 }
 0x1c7   : > { %v1769_v16 = vsel %vm359_vm8, %v1768_v63, %v1754_v37 }
 0x1c8   : > { %v1487_v10 = vpop.permute.xlu0 %1486  ;;  %v2262_v13 = vsel %vm2254_vm9, %v1769_v16, %v2251_v38 }
 0x1c9   : > { %v1526_v17 = vsel %vm357_vm7, %v4099_v52, %v1487_v10 }
 0x1ca   : > { %v325_v49 = vpop.permute.xlu1 %324 }
 0x1cb   : > { %v4132_v39 = vsel %vm349_vm3, %v361_v31, %v325_v49 }
 0x1cc   : > { %v1722_v25 = vpop.permute.xlu0 %1721 }
 0x1cd   : > { %v1761_v40 = vsel %vm357_vm7, %v1760_v36, %v1722_v25 }
 0x1ce   : > { %v578_v53 = vpop.permute.xlu1 %577 }
 0x1cf   : > { %v4138_v54 = vsel %vm353_vm6, %v601_v21, %v578_v53  ;;  %v4379_v53 = vld [vmem:[#allocation17_spill] sm:$0xff] }
 0x1d0   : > { %v2186_v57 = vpop.permute.xlu0 %2185 }
 0x1d1   : > { %v2222_v7 = vsel %vm359_vm8, %v2221_v4, %v2186_v57  ;;  %v348_v4 = vsel %vm347_vm2, %v4380_v45, %v4379_v53 }
 0x1d2   : > { %v808_v6 = vpop.permute.xlu1 %807  ;;  %2427 = vmatpush1.msk.msra.mxu0 %vm2254_vm9, %v2222_v7 }
 0x1d3   : > { %2297 = vmatprep.subr.mxu0 %v2262_v13  ;;  %v832_v57 = vsel %vm353_vm6, %v4108_v1, %v808_v6  ;;  %v4382_v6 = vld [vmem:[#allocation16_spill] sm:$0xff] }
 0x1d4   : > { %v546_v48 = vpop.permute.xlu0 %545 }
 0x1d5   : > { %v4144_v27 = vsel %vm351_vm4, %v593_v18, %v546_v48 }
 0x1d6   : > { %v1055_v14 = vpop.permute.xlu1 %1054 }
 0x1d7   : > { %v1073_v51 = vsel %vm357_vm7, %v4114_v30, %v1055_v14 }
 0x1d8   : > { %v4146_v35 = vpop.permute.xlu0 %775 }
 0x1da   : > { %v1285_v62 = vpop.permute.xlu1 %1284 }
 0x1db   : > { %v1303_v9 = vsel %vm357_vm7, %v1302_v26, %v1285_v62 }
 0x1dc   : > { %v1023_v46 = vpop.permute.xlu0 %1022 }
 0x1de   : > { %v1726_v60 = vpop.permute.xlu1 %1725 }
 0x1df   : > { %v1762_v44 = vsel %vm359_vm8, %v1761_v40, %v1726_v60  ;;  %v1065_v60 = vsel %vm355_vm5, %v4122_v43, %v1023_v46 }
 0x1e0   : > { %v1253_v33 = vpop.permute.xlu0 %1252  ;;  %v2261_v8 = vsel %vm2254_vm9, %v1762_v44, %v2250_v58  ;;  %v4381_v58 = vld [vmem:[#allocation15_spill] sm:$0xff] }
 0x1e1   : > { %2298 = vmatpush1.msra.mxu0 %v2261_v8  ;;  %v1295_v34 = vsel %vm355_vm5, %v1294_v61, %v1253_v33  ;;  %v350_v30 = vsel %vm349_vm3, %v348_v4, %v4381_v58 }
 0x1e2   : > { %v550_v23 = vpop.permute.xlu1 %549  ;;  %v352_v33 = vsel %vm351_vm4, %v350_v30, %v4382_v6 }
 0x1e4   : > { %v1491_v19 = vpop.permute.xlu0 %1490 }
 0x1e5   : > { %v1527_v42 = vsel %vm359_vm8, %v1526_v17, %v1491_v19  ;;  %v824_v19 = vsel %vm351_vm4, %v4119_v12, %v4146_v35 }
 0x1e6   : > { %v780_v47 = vpop.permute.xlu1 %779  ;;  %v2244_v11 = vrot.slane %v1527_v42, 4 }
 0x1e8   : > { %v4155_v21 = vpop.permute.xlu0 %328 }
 0x1ea   : > { %v1027_v32 = vpop.permute.xlu1 %1026 }
 0x1eb   : > { %v1066_v1 = vsel %vm357_vm7, %v1065_v60, %v1027_v32  ;;  %v4383_v32 = vld [vmem:[#allocation14_spill] sm:$0xff] }
 0x1ec   : > { %v582_v2 = vpop.permute.xlu0 %581  ;;  %v354_v29 = vsel %vm353_vm6, %v352_v33, %v4383_v32 }
 0x1ed   : > { %v603_v43 = vsel %vm355_vm5, %v4138_v54, %v582_v2 }
 0x1ee   : > { %v1257_v22 = vpop.permute.xlu1 %1256 }
 0x1ef   : > { %v1296_v38 = vsel %vm357_vm7, %v1295_v34, %v1257_v22 }
 0x1f0   : > { %v812_v0 = vpop.permute.xlu0 %811 }
 0x1f1   : > { %v833_v48 = vsel %vm355_vm5, %v832_v57, %v812_v0  ;;  %v825_v0 = vsel %vm353_vm6, %v824_v19, %v780_v47 }
 0x1f2   : > { %v4157_v28 = vpop.permute.xlu1 %332 }
 0x1f4   : > { %v1059_v41 = vpop.permute.xlu0 %1058 }
 0x1f5   : > { %v1074_v25 = vsel %vm359_vm8, %v1073_v51, %v1059_v41  ;;  %v595_v41 = vsel %vm353_vm6, %v4144_v27, %v550_v23  ;;  %v363_v27 = vsel %vm351_vm4, %v4132_v39, %v4155_v21 }
 0x1f6   : > { %v586_v24 = vpop.permute.xlu1 %585  ;;  %v2239_v62 = vrot.slane %v1074_v25, 4 }
 0x1f7   : > { %v604_v26 = vsel %vm357_vm7, %v603_v43, %v586_v24  ;;  %v364_v24 = vsel %vm353_vm6, %v363_v27, %v4157_v28 }
 0x1f8   : > { %v1289_v18 = vpop.permute.xlu0 %1288 }
 0x1f9   : > { %v1304_v20 = vsel %vm359_vm8, %v1303_v9, %v1289_v18 }
 0x1fa   : > { %v816_v59 = vpop.permute.xlu1 %815  ;;  %v2260_v5 = vsel %vm2254_vm9, %v1304_v20, %v2245_v56 }
 0x1fb   : > { %2299 = vmatprep.subr.mxu0 %v2260_v5  ;;  %v834_v15 = vsel %vm357_vm7, %v833_v48, %v816_v59 }
 0x1fc   : > { %v554_v3 = vpop.permute.xlu0 %553 }
 0x1fd   : > { %v596_v56 = vsel %vm355_vm5, %v595_v41, %v554_v3 }
 0x1fe   : > { %v1261_v63 = vpop.permute.xlu1 %1260 }
 0x1ff   : > { %v1297_v37 = vsel %vm359_vm8, %v1296_v38, %v1261_v63 }
 0x200   : > { %v784_v16 = vpop.permute.xlu0 %783  ;;  %v2259_v52 = vsel %vm2254_vm9, %v1297_v37, %v2244_v11  ;;  %v142_v11 = vld [vmem:[%s4271_s1] sm:$0xff] }
 0x201   : > { %2300 = vmatpush1.msra.mxu0 %v2259_v52  ;;  %v826_v46 = vsel %vm355_vm5, %v825_v0, %v784_v16 }
 0x202   : > { %v558_v10 = vpop.permute.xlu1 %557 }
 0x203   : > { %v597_v23 = vsel %vm357_vm7, %v596_v56, %v558_v10 }
 0x204   : > { %v1031_v13 = vpop.permute.xlu0 %1030 }
 0x205   : > { %v1067_v22 = vsel %vm359_vm8, %v1066_v1, %v1031_v13 }
 0x206   : > { %v788_v55 = vpop.permute.xlu1 %787  ;;  %v2238_v12 = vrot.slane %v1067_v22, 4 }
 0x207   : > { %v827_v35 = vsel %vm357_vm7, %v826_v46, %v788_v55 }
 0x208   : > { %v337_v31 = vpop.permute.xlu0 %336 }
 0x209   : > { %v365_v59 = vsel %vm355_vm5, %v364_v24, %v337_v31 }
 0x20a   : > { %v309_v49 = vpop.permute.xlu1 %308 }
 0x20b   : > { %v356_v18 = vsel %vm355_vm5, %v354_v29, %v309_v49 }
 0x20c   : > { %v590_v50 = vpop.permute.xlu0 %589 }
 0x20d   : > { %v605_v54 = vsel %vm359_vm8, %v604_v26, %v590_v50 }
 0x20e   : > { %v562_v7 = vpop.permute.xlu1 %561  ;;  %v2233_v21 = vrot.slane %v605_v54, 4 }
 0x20f   : > { %v598_v20 = vsel %vm359_vm8, %v597_v23, %v562_v7 }
 0x210   : > { %v820_v36 = vpop.permute.xlu0 %819  ;;  %v2232_v28 = vrot.slane %v598_v20, 4 }
 0x211   : > { %v835_v14 = vsel %vm359_vm8, %v834_v15, %v820_v36 }
 0x212   : > { %v2258_v40 = vsel %vm2254_vm9, %v835_v14, %v2239_v62  ;;  %v313_v44 = vpop.permute.xlu1 %312 }
 0x213   : > { %2301 = vmatprep.subr.mxu0 %v2258_v40  ;;  %v358_v39 = vsel %vm357_vm7, %v356_v18, %v313_v44 }
 0x214   : > { %v341_v8 = vpop.permute.xlu0 %340 }
 0x215   : > { %v366_v5 = vsel %vm357_vm7, %v365_v59, %v341_v8 }
 0x216   : > { %v317_v47 = vpop.permute.xlu1 %316 }
 0x217   : > { %v360_v42 = vsel %vm359_vm8, %v358_v39, %v317_v47 }
 0x218   : > { %v792_v9 = vpop.permute.xlu0 %791  ;;  %v2255_v38 = vsel %vm2254_vm9, %v360_v42, %v2232_v28 }
 0x219   : > { %v828_v2 = vsel %vm359_vm8, %v827_v35, %v792_v9 }
 0x21a   : > { %v2257_v17 = vsel %vm2254_vm9, %v828_v2, %v2238_v12 }
 0x21b   : > { %2302 = vmatpush1.msra.mxu0 %v2257_v17 }
 0x21c   : > { %v345_v61 = vpop.permute.xlu0 %344 }
 0x21d   : > { %v367_v3 = vsel %vm359_vm8, %v366_v5, %v345_v61 }
 0x21e   : > { %v2256_v34 = vsel %vm2254_vm9, %v367_v3, %v2233_v21 }
 0x21f   : > { %2303 = vmatprep.subr.mxu0 %v2256_v34 }
 0x220   : > { %2304 = vmatpush1.msra.mxu0 %v2255_v38 }
 0x221   : > { %2428 = vmatmul.mubr.msk.f32.vlgmr.msra.gmra.mxu0 %vm2263_vm10, %v142_v11 }
 0x2e1   : > { %v2339_v63 = vpop.f32.mrf.mxu0 }
 0x2e2   : > { %2344 = vst [vmem:[%s136_s17] sm:$0xff] %v2339_v63 }
 0x2e3   : > { %v2341_v37 = vpop.f32.mrf.mxu0 }
 0x2e4   : > { %2345 = vst [vmem:[%s136_s17 + $0x8] sm:$0xff] %v2341_v37 }
 0x2e5   : > { %2512 = shalt.err (!%p2509_p3)
}
 0x2e6   : > { %s2513_s30 = scalar_lea.hbm %s2359_s25, 256  ;;  %s2517_s5 = scalar_lea.hbm %s4272_s2, 512 }
 0x2e7   : > { %p2514_p4 = scmp.ne.s32.totalorder %s2359_s25, %s2513_s30  ;;  %p2518_p9 = scmp.lt.s32.totalorder %s2359_s25, %s4272_s2 }
 0x2e8   : > { %p2519_p10 = scmp.lt.s32.totalorder %s2517_s5, %s2513_s30 }
 0x2e9   : > { %p2515_p7 = pnand %p2514_p4, %p2627_p5 }
 0x2ea   : > { %p2520_p11 = por %p2519_p10, %p2518_p9 }
 0x2eb   : > { %p2516_p8 = pneg %p2515_p7 }
 0x2ed   : > { %p2521_p12 = pnand %p2520_p11, %p2516_p8 }
 0x2ef   : > { %2524 = shalt.err (!%p2521_p12)
}
 0x2f0   : > { %2436 = dma.vmem_to_hbm [thread:$0]  (%p2627_p5), %s4232_s21, 256, %s2359_s25, %s2347_s26  }
 0x2f1 PF: > { %p2442_p13 = scmp.ge.s32.totalorder %s2559_s12, 2  ;;  %s2373_s8 = sand.u32 1, %s2547_s9  }
 0x2f2   : > { %s2374_s14 = scalar_lea.sflag [#allocation3], %s2373_s8 }
 0x2f3   : > { %p2439_p0 = pnand %p2442_p13, %p2631_p6 }
 0x2f5   : > { %p2440_p1 = pneg %p2439_p0 }
 0x2f7   : > { %2542 = dma.done.wait (%p2440_p1), %s2374_s14, 256  }
 0x2f8   : > { %2544 = vsyncadd (%p2440_p1), %s2374_s14, 4294967040  ;;  %p12_p2 = scmp.ge.s32.totalorder %s2614_s15, 4   ;;  %s4384_s9 = smov %s2551_s10 }
 0x2f9   : > { %s4385_s10 = smov %s2555_s11  ;;  %s4386_s11 = smov %s2625_s18 }
 0x2fa   : > { %s4387_s12 = smov %s2614_s15  ;;  %14 = sbr.rel (!%p12_p2) target bundleno = 3 (0x3), region = 63 }
 0x2ff   :  { %2379 = vsyncpa [#allocation3], 1 }
 0x300   :  { %2381 = vsyncpa [#allocation3 + $0x1], 1 }

</bundles_post_ra>
